<compile_context>
chip_gen: v6e
topology: v6e:2x2x1
jax: 0.10.0
libtpu: 0.0.40
codegen_flags: <defaults>
</compile_context>

<pallas_src>
import math

import jax
import jax.numpy as jnp
from jax import lax
from jax.experimental import pallas as pl
from jax.experimental.pallas import tpu as pltpu

# keep the plain-JAX reference / parameter folding in true f32 so the check is tight
jax.config.update("jax_default_matmul_precision", "float32")


# ----------------------------------------------------------------------------- #
# Pure-JAX reference: mirrors MACE Contraction.forward einsums (correlation = 3) #
# ----------------------------------------------------------------------------- #
def _contraction_ref(x, y, Us, Ws, lmax):
    """x: [N, C, I], y: [N, E].  Returns [N, C * (2*lmax+1)]."""
    U3, U2, U1 = Us
    W3, W2, W1 = Ws
    if lmax == 0:
        out = jnp.einsum('wxik,ekc,bci,be->bcwx', U3, W3, x, y)
        c2 = jnp.einsum('wxk,ekc,be->bcwx', U2, W2, y)
        out = jnp.einsum('bcwi,bci->bcw', c2 + out, x)
        c1 = jnp.einsum('wk,ekc,be->bcw', U1, W1, y)
        out = jnp.einsum('bci,bci->bc', c1 + out, x)
    else:
        out = jnp.einsum('mxvik,ekc,bci,be->bcmxv', U3, W3, x, y)
        c2 = jnp.einsum('mxvk,ekc,be->bcmxv', U2, W2, y)
        out = jnp.einsum('bcmxi,bci->bcmx', c2 + out, x)
        c1 = jnp.einsum('mxk,ekc,be->bcmx', U1, W1, y)
        out = jnp.einsum('bcmi,bci->bcm', c1 + out, x)
    return out.reshape(out.shape[0], -1)


# ------------------------------------------------------------------------ #
# Parameter-only folding (no node data): U_nu contracted with W_nu over k.  #
# ------------------------------------------------------------------------ #
def _fold_params(Us, Ws, lmax, I):
    U3, U2, U1 = Us
    W3, W2, W1 = Ws
    if lmax == 0:
        A3 = jnp.einsum('wxik,ekc->eiwxc', U3, W3)     # [E, I, w, x, C]
        B2 = jnp.einsum('wxk,ekc->ewxc', U2, W2)       # [E, w, x, C]
        B1 = jnp.einsum('wk,ekc->ewc', U1, W1)         # [E, w, C]
    else:
        A3 = jnp.einsum('mxvik,ekc->eimxvc', U3, W3)   # [E, I, m, x, v, C]
        B2 = jnp.einsum('mxvk,ekc->emxvc', U2, W2)     # [E, m, x, v, C]
        B1 = jnp.einsum('mxk,ekc->emxc', U1, W1)       # [E, m, x, C]
    E, C = A3.shape[0], A3.shape[-1]
    D = math.prod(A3.shape[2:-1])                      # main product-basis dim
    D2 = math.prod(B1.shape[1:-1])                     # dim after level-2 contraction
    A3r = A3.reshape(E, I, D, C).astype(jnp.float32)
    B2r = B2.reshape(E, D, C).astype(jnp.float32)
    B1r = B1.reshape(E, D2, C).astype(jnp.float32)
    return A3r, B2r, B1r


def _pick_block(n):
    """Node tile: biggest of {128,256,512} keeping >=4 grid blocks (2 per TC on a
    v7x megacore), else >=2 blocks, else a single 128 block.  Capped at 512 on
    purpose: per-step VMEM is only ~3 MiB and 512->1024 buys ~1% of HBM roofline
    while doubling live-vreg pressure in the epilogue."""
    for tb in (512, 256, 128):
        if n >= 4 * tb:
            return tb
    for tb in (512, 256, 128):
        if n >= 2 * tb:
            return tb
    return 128


# --------------------------- #
# Pallas kernel (hot path)    #
# --------------------------- #
def _make_fused_kernel(E, I, C, TB, sections):
    """sections: tuple of (row_off_main, row_off_c1, d_out, out_row_off)."""

    def kernel(w_ref, x_ref, y_ref, out_ref, t_ref):
        # ---- single MXU matmul: (element,irrep) contraction + fused c2/c1 rows ----
        x = x_ref[...]                                   # [I, C, TB] f32
        y16 = y_ref[...]                                 # [16, TB] f32 (rows >= E are 0)
        # z[(e*I + i)*C + c, b] = y[e, b] * x[i, c, b]   (columns ordered (e, i, c))
        z = (y16[:E, None, None, :] * x[None, :, :, :]).reshape(E * I * C, TB)
        zk = jnp.concatenate([z, y16], axis=0)           # [KSEG, TB] f32, KSEG % 16 == 0
        # manual bf16x3 split, fused along K so the MXU accumulates all three
        # partial products internally (2 K-passes on v6e/v7x, 3 on v5e):
        #   t = W_hi @ z_hi + W_lo @ z_hi + W_hi @ z_lo
        z_hi = zk.astype(jnp.bfloat16)
        z_lo = (zk - z_hi.astype(jnp.float32)).astype(jnp.bfloat16)
        z_big = jnp.concatenate([z_hi, z_hi, z_lo], axis=0)      # [3*KSEG, TB] bf16
        t_ref[...] = jnp.dot(w_ref[...], z_big,
                             preferred_element_type=jnp.float32,
                             precision=lax.Precision.DEFAULT)     # bf16 operands: 1 pass each

        # ---- VPU epilogue: level-2 then level-1 contractions against x.  Slices of
        #      x / t are re-read from VMEM per use so only ~16 vregs stay live. ----
        for (off_main, off_c1, d_out, out_off) in sections:
            for m in range(d_out):
                acc = jnp.zeros((C, TB), jnp.float32)
                for jp in range(I):
                    g = m * I + jp
                    base = off_main + g * I * C
                    s = t_ref[pl.ds(off_c1 + g * C, C), :]        # c1 term  [C, TB]
                    for i in range(I):                            # level-2 contraction
                        s = s + t_ref[pl.ds(base + i * C, C), :] * x_ref[i]
                    acc = acc + s * x_ref[jp]                     # level-1 contraction
                out_ref[pl.ds(out_off + m * C, C), :] = acc

    return kernel


def _fused_contraction_pallas(x_t, y16, w_full, sections, out_rows, E, TB):
    I, C, N = x_t.shape
    R, K = w_full.shape
    kernel = _make_fused_kernel(E, I, C, TB, sections)

    return pl.pallas_call(
        kernel,
        out_shape=jax.ShapeDtypeStruct((out_rows, N), jnp.float32),
        grid_spec=pltpu.PrefetchScalarGridSpec(
            num_scalar_prefetch=0,
            grid=(N // TB,),
            in_specs=[
                # constant weights: revisited block -> DMA'd once (double-buffer waste
                # is ~0.5 MiB in bf16; acceptable, see review note).
                pl.BlockSpec((R, K), lambda nb: (0, 0)),
                pl.BlockSpec((I, C, TB), lambda nb: (0, 0, nb)),
                pl.BlockSpec((16, TB), lambda nb: (0, nb)),
            ],
            out_specs=pl.BlockSpec((out_rows, TB), lambda nb: (0, nb)),
            scratch_shapes=[pltpu.VMEM((R, TB), jnp.float32)],
        ),
        compiler_params=pltpu.CompilerParams(
            dimension_semantics=("parallel",),
            vmem_limit_bytes=32 * 1024 * 1024,
        ),
    )(w_full, x_t, y16)


# --------------------------- #
# Module wrapper              #
# --------------------------- #
class EquivariantProductBasisBlockPallas:
    """JAX/Pallas port of geqtrain EquivariantProductBasisBlock (MACE SymmetricContraction).

    Baked-in config:
      node_feats_irreps = f"{C}x0e + {C}x1o"  -> coupling irreps "1x0e + 1x1o", I = 4
      target_irreps     = f"{C}x0e + {C}x1o"  -> two Contractions (lmax = 0 and lmax = 1)
      correlation = 3, num_elements = E
    """

    def __init__(self, key, num_channels=8, num_elements=3, correlation=3,
                 num_params=(4, 3, 2), block_nodes=None):
        assert correlation == 3, "this synthetic port is specialized to correlation=3"
        self.C = C = num_channels
        self.E = E = num_elements
        self.I = I = 4                  # dim of coupling irreps "1x0e + 1x1o"
        assert E <= 16
        self.correlation = correlation
        self.block_nodes = block_nodes  # None -> auto-pick per call
        self.lmaxs = (0, 1)             # target irreps: C x 0e  and  C x 1o
        K3, K2, K1 = num_params

        keys = iter(jax.random.split(key, 6 * len(self.lmaxs)))
        self.contractions = []
        folded = []
        for lmax in self.lmaxs:
            lead = (2 * lmax + 1,) if lmax > 0 else ()
            # TODO(synk): in the real module the U_* buffers are generalized Clebsch-Gordan
            # tensors from e3nn's U_matrix_real; synthesized here as deterministic random
            # constants with the correct shapes (no e3nn available in-script).  The review's
            # U3 permutation-symmetry row folding (~30% fewer rows) only applies to the real
            # symmetric CG tensors, so it is not applied to these synthetic ones.
            U3 = jax.random.normal(next(keys), lead + (I,) * 3 + (K3,), jnp.float32)
            U2 = jax.random.normal(next(keys), lead + (I,) * 2 + (K2,), jnp.float32)
            U1 = jax.random.normal(next(keys), lead + (I,) * 1 + (K1,), jnp.float32)
            W3 = jax.random.normal(next(keys), (E, K3, C), jnp.float32) / K3
            W2 = jax.random.normal(next(keys), (E, K2, C), jnp.float32) / K2
            W1 = jax.random.normal(next(keys), (E, K1, C), jnp.float32) / K1
            self.contractions.append(dict(lmax=lmax, Us=(U3, U2, U1), Ws=(W3, W2, W1)))
            folded.append(_fold_params((U3, U2, U1), (W3, W2, W1), lmax, I))

        # ---- build the fused, block-diagonal-in-channel 2-D weight matrix ----
        # Row layout: [t_l0 | t_l1 | c1_l0 | c1_l1], each row = d*C + c.
        # Column layout per K-segment: E*I*C "x*y" columns, then E pure-y columns
        # (the fused U2*W2 / U1*W1 terms), zero-padded to KSEG (16-aligned for bf16).
        eye_c = jnp.eye(C, dtype=jnp.float32)
        xy_blocks, y_blocks = [], []
        row = 0
        off_main, off_c1, d_outs = [], [], []
        for A3r, B2r, _ in folded:
            D = A3r.shape[2]
            xy_blocks.append(
                jnp.einsum('eidc,cf->dceif', A3r, eye_c).reshape(D * C, E * I * C))
            y_blocks.append(jnp.transpose(B2r, (1, 2, 0)).reshape(D * C, E))
            off_main.append(row)
            row += D * C
        for _, _, B1r in folded:
            D2 = B1r.shape[1]
            xy_blocks.append(jnp.zeros((D2 * C, E * I * C), jnp.float32))
            y_blocks.append(jnp.transpose(B1r, (1, 2, 0)).reshape(D2 * C, E))
            off_c1.append(row)
            row += D2 * C
            d_outs.append(D2 // I)
        self.R = row
        W_xy = jnp.concatenate(xy_blocks, axis=0)                  # [R, E*I*C]
        W_y = jnp.concatenate(y_blocks, axis=0)                    # [R, E]   (fused!)
        self.KSEG = KSEG = E * I * C + 16
        W_k = jnp.concatenate(
            [W_xy, W_y, jnp.zeros((row, 16 - E), jnp.float32)], axis=1)   # [R, KSEG]
        # manual bf16x3 split, fused along K (pairs with z_big = [z_hi; z_hi; z_lo]):
        W_hi = W_k.astype(jnp.bfloat16)
        W_lo = (W_k - W_hi.astype(jnp.float32)).astype(jnp.bfloat16)
        self.W_full = jnp.concatenate([W_hi, W_lo, W_hi], axis=1)  # [R, 3*KSEG] bf16

        out_off, oo = [], 0
        for d in d_outs:
            out_off.append(oo)
            oo += d * C
        self.out_rows = oo                       # = C * sum(2l+1) = 4*C
        self.d_outs = tuple(d_outs)
        self.out_off = tuple(out_off)
        self.sections = tuple(
            (off_main[i], off_c1[i], d_outs[i], out_off[i]) for i in range(len(folded)))

    def __call__(self, node_feats, node_attrs):
        N = node_feats.shape[0]
        C, E = self.C, self.E
        TB = self.block_nodes or _pick_block(N)
        n_pad = -(-N // TB) * TB

        # TODO(synk): have the producer emit node_feats already in [I, C, N] layout and
        # consume the kernel's lane-dense [4C, N] slab directly -- these wrapper-side
        # transposes are extra HBM read+write round trips of x and of the output and are
        # the last remaining off-roofline traffic; kept here only to preserve the PyTorch
        # [N, C, I] / [N, E] -> [N, 4C] interface of EquivariantProductBasisBlock.
        x_t = jnp.transpose(node_feats, (2, 1, 0)).astype(jnp.float32)   # [I, C, N]
        y_t = jnp.transpose(node_attrs, (1, 0)).astype(jnp.float32)      # [E, N]
        y_t = jnp.pad(y_t, ((0, 16 - E), (0, 0)))                        # [16, N]
        if n_pad != N:   # zero-pad tail nodes (zero attr/feat rows -> zero output rows)
            x_t = jnp.pad(x_t, ((0, 0), (0, 0), (0, n_pad - N)))
            y_t = jnp.pad(y_t, ((0, 0), (0, n_pad - N)))

        o = _fused_contraction_pallas(x_t, y_t, self.W_full, self.sections,
                                      self.out_rows, E, TB)              # [4C, n_pad]
        o = o[:, :N]

        pieces = []
        for d_out, off in zip(self.d_outs, self.out_off):
            blk = o[off:off + d_out * C]                                  # row = m*C + c
            pieces.append(jnp.transpose(blk.reshape(d_out, C, N),
                                        (2, 1, 0)).reshape(N, C * d_out))  # col = c*d_out+m
        return jnp.concatenate(pieces, axis=-1)

    def reference(self, node_feats, node_attrs):
        x = node_feats.astype(jnp.float32)
        y = node_attrs.astype(jnp.float32)
        outs = [_contraction_ref(x, y, con["Us"], con["Ws"], con["lmax"])
                for con in self.contractions]
        return jnp.concatenate(outs, axis=-1)


if __name__ == "__main__":
    key = jax.random.PRNGKey(0)
    k_param, k_feat, k_elem = jax.random.split(key, 3)

    C, E, corr = 8, 3, 3
    block = EquivariantProductBasisBlockPallas(
        k_param, num_channels=C, num_elements=E, correlation=corr)

    for N in (256, 200):   # N=200 exercises the padded-tail (N % TB != 0) path
        kf = jax.random.fold_in(k_feat, N)
        ke = jax.random.fold_in(k_elem, N)
        node_feats = jax.random.normal(kf, (N, C, block.I), dtype=jnp.float32)  # [N, C, I]
        species = jax.random.randint(ke, (N,), 0, E)
        node_attrs = jax.nn.one_hot(species, E, dtype=jnp.float32)              # [N, E]

        out = jax.block_until_ready(block(node_feats, node_attrs))
        ref = block.reference(node_feats, node_attrs)
        assert out.shape == ref.shape == (N, C * 4), (out.shape, ref.shape)
        err = float(jnp.max(jnp.abs(out - ref)))
        scale = float(jnp.max(jnp.abs(ref))) + 1e-30
        assert err / scale < 1e-3, f"N={N}: mismatch max_abs_err={err}, scale={scale}"

    print("KERNEL_OK")
</pallas_src>

<mosaic_0001>
module attributes {stable_mosaic.version = 11 : i64} {
  func.func @kernel(%arg0: i32, %arg1: memref<640x336xbf16, #tpu.memory_space<vmem>>, %arg2: memref<4x8x128xf32, #tpu.memory_space<vmem>>, %arg3: memref<16x128xf32, #tpu.memory_space<vmem>>, %arg4: memref<32x128xf32, #tpu.memory_space<vmem>>, %arg5: memref<640x128xf32, #tpu.memory_space<vmem>>) attributes {dimension_semantics = [#tpu.dimension_semantics<parallel>], iteration_bounds = array<i64: 2>, scalar_prefetch = 0 : i64, scratch_operands = 1 : i64, tpu.core_type = #tpu.core_type<tc>, window_params = [{pipeline_mode = #tpu.pipeline_mode<synchronous>, transform_indices = @transform_0, window_bounds = array<i64: 640, 336>}, {transform_indices = @transform_1, window_bounds = array<i64: 4, 8, 128>}, {transform_indices = @transform_2, window_bounds = array<i64: 16, 128>}, {transform_indices = @transform_3, window_bounds = array<i64: 32, 128>}]} {
    %c0 = arith.constant 0 : index
    %c0_0 = arith.constant 0 : index
    %c0_1 = arith.constant 0 : index
    %0 = vector.load %arg2[%c0, %c0_0, %c0_1] : memref<4x8x128xf32, #tpu.memory_space<vmem>>, vector<4x8x128xf32>
    %c0_2 = arith.constant 0 : index
    %c0_3 = arith.constant 0 : index
    %1 = vector.load %arg3[%c0_2, %c0_3] : memref<16x128xf32, #tpu.memory_space<vmem>>, vector<16x128xf32>
    %2 = vector.extract_strided_slice %1 {offsets = [0, 0], sizes = [3, 128], strides = [1, 1]} : vector<16x128xf32> to vector<3x128xf32>
    %3 = vector.shape_cast %2 : vector<3x128xf32> to vector<3x1x1x128xf32>
    %4 = vector.shape_cast %0 : vector<4x8x128xf32> to vector<1x4x8x128xf32>
    %5 = vector.broadcast %3 : vector<3x1x1x128xf32> to vector<3x4x8x128xf32>
    %6 = vector.broadcast %4 : vector<1x4x8x128xf32> to vector<3x4x8x128xf32>
    %7 = arith.mulf %5, %6 : vector<3x4x8x128xf32>
    %8 = vector.shape_cast %7 : vector<3x4x8x128xf32> to vector<96x128xf32>
    %9 = tpu.concatenate %8, %1 in 0 : vector<96x128xf32>, vector<16x128xf32> -> vector<112x128xf32>
    %10 = arith.truncf %9 : vector<112x128xf32> to vector<112x128xbf16>
    %11 = arith.extf %10 : vector<112x128xbf16> to vector<112x128xf32>
    %12 = arith.subf %9, %11 : vector<112x128xf32>
    %13 = arith.truncf %12 : vector<112x128xf32> to vector<112x128xbf16>
    %14 = tpu.concatenate %10, %10, %13 in 0 : vector<112x128xbf16>, vector<112x128xbf16>, vector<112x128xbf16> -> vector<336x128xbf16>
    %c0_4 = arith.constant 0 : index
    %c0_5 = arith.constant 0 : index
    %15 = vector.load %arg1[%c0_4, %c0_5] : memref<640x336xbf16, #tpu.memory_space<vmem>>, vector<640x336xbf16>
    %cst = arith.constant dense<0.000000e+00> : vector<640x128xf32>
    %16 = tpu.matmul %15, %14, %cst {dimension_numbers = #tpu.dot_dimension_numbers<[1], [0], [0], [1], [0, 0, 1, 1], [], []>} : vector<640x336xbf16>, vector<336x128xbf16>, vector<640x128xf32> -> vector<640x128xf32>
    %c0_6 = arith.constant 0 : index
    %c0_7 = arith.constant 0 : index
    %17 = vector.load %arg5[%c0_6, %c0_7] : memref<640x128xf32, #tpu.memory_space<vmem>>, vector<640x128xf32>
    tpu.vector_store %arg5[%c0_6, %c0_7], %16 {strides = array<i32>} : memref<640x128xf32, #tpu.memory_space<vmem>>, vector<640x128xf32>,
    %cst_8 = arith.constant 0.000000e+00 : f32
    %18 = vector.broadcast %cst_8 : f32 to vector<8x128xf32>
    %c512 = arith.constant 512 : index
    %c0_9 = arith.constant 0 : index
    %19 = vector.load %arg5[%c512, %c0_9] : memref<640x128xf32, #tpu.memory_space<vmem>>, vector<8x128xf32>
    %c0_10 = arith.constant 0 : index
    %c0_11 = arith.constant 0 : index
    %20 = vector.load %arg5[%c0_10, %c0_11] : memref<640x128xf32, #tpu.memory_space<vmem>>, vector<8x128xf32>
    %c0_12 = arith.constant 0 : index
    %c0_13 = arith.constant 0 : index
    %c0_14 = arith.constant 0 : index
    %21 = vector.load %arg2[%c0_12, %c0_13, %c0_14] : memref<4x8x128xf32, #tpu.memory_space<vmem>>, vector<1x8x128xf32>
    %22 = vector.shape_cast %21 : vector<1x8x128xf32> to vector<8x128xf32>
    %23 = arith.mulf %20, %22 : vector<8x128xf32>
    %24 = arith.addf %19, %23 : vector<8x128xf32>
    %c8 = arith.constant 8 : index
    %c0_15 = arith.constant 0 : index
    %25 = vector.load %arg5[%c8, %c0_15] : memref<640x128xf32, #tpu.memory_space<vmem>>, vector<8x128xf32>
    %c1 = arith.constant 1 : index
    %c0_16 = arith.constant 0 : index
    %c0_17 = arith.constant 0 : index
    %26 = vector.load %arg2[%c1, %c0_16, %c0_17] : memref<4x8x128xf32, #tpu.memory_space<vmem>>, vector<1x8x128xf32>
    %27 = vector.shape_cast %26 : vector<1x8x128xf32> to vector<8x128xf32>
    %28 = arith.mulf %25, %27 : vector<8x128xf32>
    %29 = arith.addf %24, %28 : vector<8x128xf32>
    %c16 = arith.constant 16 : index
    %c0_18 = arith.constant 0 : index
    %30 = vector.load %arg5[%c16, %c0_18] : memref<640x128xf32, #tpu.memory_space<vmem>>, vector<8x128xf32>
    %c2 = arith.constant 2 : index
    %c0_19 = arith.constant 0 : index
    %c0_20 = arith.constant 0 : index
    %31 = vector.load %arg2[%c2, %c0_19, %c0_20] : memref<4x8x128xf32, #tpu.memory_space<vmem>>, vector<1x8x128xf32>
    %32 = vector.shape_cast %31 : vector<1x8x128xf32> to vector<8x128xf32>
    %33 = arith.mulf %30, %32 : vector<8x128xf32>
    %34 = arith.addf %29, %33 : vector<8x128xf32>
    %c24 = arith.constant 24 : index
    %c0_21 = arith.constant 0 : index
    %35 = vector.load %arg5[%c24, %c0_21] : memref<640x128xf32, #tpu.memory_space<vmem>>, vector<8x128xf32>
    %c3 = arith.constant 3 : index
    %c0_22 = arith.constant 0 : index
    %c0_23 = arith.constant 0 : index
    %36 = vector.load %arg2[%c3, %c0_22, %c0_23] : memref<4x8x128xf32, #tpu.memory_space<vmem>>, vector<1x8x128xf32>
    %37 = vector.shape_cast %36 : vector<1x8x128xf32> to vector<8x128xf32>
    %38 = arith.mulf %35, %37 : vector<8x128xf32>
    %39 = arith.addf %34, %38 : vector<8x128xf32>
    %c0_24 = arith.constant 0 : index
    %c0_25 = arith.constant 0 : index
    %c0_26 = arith.constant 0 : index
    %40 = vector.load %arg2[%c0_24, %c0_25, %c0_26] : memref<4x8x128xf32, #tpu.memory_space<vmem>>, vector<1x8x128xf32>
    %41 = vector.shape_cast %40 : vector<1x8x128xf32> to vector<8x128xf32>
    %42 = arith.mulf %39, %41 : vector<8x128xf32>
    %43 = arith.addf %18, %42 : vector<8x128xf32>
    %c520 = arith.constant 520 : index
    %c0_27 = arith.constant 0 : index
    %44 = vector.load %arg5[%c520, %c0_27] : memref<640x128xf32, #tpu.memory_space<vmem>>, vector<8x128xf32>
    %c32 = arith.constant 32 : index
    %c0_28 = arith.constant 0 : index
    %45 = vector.load %arg5[%c32, %c0_28] : memref<640x128xf32, #tpu.memory_space<vmem>>, vector<8x128xf32>
    %c0_29 = arith.constant 0 : index
    %c0_30 = arith.constant 0 : index
    %c0_31 = arith.constant 0 : index
    %46 = vector.load %arg2[%c0_29, %c0_30, %c0_31] : memref<4x8x128xf32, #tpu.memory_space<vmem>>, vector<1x8x128xf32>
    %47 = vector.shape_cast %46 : vector<1x8x128xf32> to vector<8x128xf32>
    %48 = arith.mulf %45, %47 : vector<8x128xf32>
    %49 = arith.addf %44, %48 : vector<8x128xf32>
    %c40 = arith.constant 40 : index
    %c0_32 = arith.constant 0 : index
    %50 = vector.load %arg5[%c40, %c0_32] : memref<640x128xf32, #tpu.memory_space<vmem>>, vector<8x128xf32>
    %c1_33 = arith.constant 1 : index
    %c0_34 = arith.constant 0 : index
    %c0_35 = arith.constant 0 : index
    %51 = vector.load %arg2[%c1_33, %c0_34, %c0_35] : memref<4x8x128xf32, #tpu.memory_space<vmem>>, vector<1x8x128xf32>
    %52 = vector.shape_cast %51 : vector<1x8x128xf32> to vector<8x128xf32>
    %53 = arith.mulf %50, %52 : vector<8x128xf32>
    %54 = arith.addf %49, %53 : vector<8x128xf32>
    %c48 = arith.constant 48 : index
    %c0_36 = arith.constant 0 : index
    %55 = vector.load %arg5[%c48, %c0_36] : memref<640x128xf32, #tpu.memory_space<vmem>>, vector<8x128xf32>
    %c2_37 = arith.constant 2 : index
    %c0_38 = arith.constant 0 : index
    %c0_39 = arith.constant 0 : index
    %56 = vector.load %arg2[%c2_37, %c0_38, %c0_39] : memref<4x8x128xf32, #tpu.memory_space<vmem>>, vector<1x8x128xf32>
    %57 = vector.shape_cast %56 : vector<1x8x128xf32> to vector<8x128xf32>
    %58 = arith.mulf %55, %57 : vector<8x128xf32>
    %59 = arith.addf %54, %58 : vector<8x128xf32>
    %c56 = arith.constant 56 : index
    %c0_40 = arith.constant 0 : index
    %60 = vector.load %arg5[%c56, %c0_40] : memref<640x128xf32, #tpu.memory_space<vmem>>, vector<8x128xf32>
    %c3_41 = arith.constant 3 : index
    %c0_42 = arith.constant 0 : index
    %c0_43 = arith.constant 0 : index
    %61 = vector.load %arg2[%c3_41, %c0_42, %c0_43] : memref<4x8x128xf32, #tpu.memory_space<vmem>>, vector<1x8x128xf32>
    %62 = vector.shape_cast %61 : vector<1x8x128xf32> to vector<8x128xf32>
    %63 = arith.mulf %60, %62 : vector<8x128xf32>
    %64 = arith.addf %59, %63 : vector<8x128xf32>
    %c1_44 = arith.constant 1 : index
    %c0_45 = arith.constant 0 : index
    %c0_46 = arith.constant 0 : index
    %65 = vector.load %arg2[%c1_44, %c0_45, %c0_46] : memref<4x8x128xf32, #tpu.memory_space<vmem>>, vector<1x8x128xf32>
    %66 = vector.shape_cast %65 : vector<1x8x128xf32> to vector<8x128xf32>
    %67 = arith.mulf %64, %66 : vector<8x128xf32>
    %68 = arith.addf %43, %67 : vector<8x128xf32>
    %c528 = arith.constant 528 : index
    %c0_47 = arith.constant 0 : index
    %69 = vector.load %arg5[%c528, %c0_47] : memref<640x128xf32, #tpu.memory_space<vmem>>, vector<8x128xf32>
    %c64 = arith.constant 64 : index
    %c0_48 = arith.constant 0 : index
    %70 = vector.load %arg5[%c64, %c0_48] : memref<640x128xf32, #tpu.memory_space<vmem>>, vector<8x128xf32>
    %c0_49 = arith.constant 0 : index
    %c0_50 = arith.constant 0 : index
    %c0_51 = arith.constant 0 : index
    %71 = vector.load %arg2[%c0_49, %c0_50, %c0_51] : memref<4x8x128xf32, #tpu.memory_space<vmem>>, vector<1x8x128xf32>
    %72 = vector.shape_cast %71 : vector<1x8x128xf32> to vector<8x128xf32>
    %73 = arith.mulf %70, %72 : vector<8x128xf32>
    %74 = arith.addf %69, %73 : vector<8x128xf32>
    %c72 = arith.constant 72 : index
    %c0_52 = arith.constant 0 : index
    %75 = vector.load %arg5[%c72, %c0_52] : memref<640x128xf32, #tpu.memory_space<vmem>>, vector<8x128xf32>
    %c1_53 = arith.constant 1 : index
    %c0_54 = arith.constant 0 : index
    %c0_55 = arith.constant 0 : index
    %76 = vector.load %arg2[%c1_53, %c0_54, %c0_55] : memref<4x8x128xf32, #tpu.memory_space<vmem>>, vector<1x8x128xf32>
    %77 = vector.shape_cast %76 : vector<1x8x128xf32> to vector<8x128xf32>
    %78 = arith.mulf %75, %77 : vector<8x128xf32>
    %79 = arith.addf %74, %78 : vector<8x128xf32>
    %c80 = arith.constant 80 : index
    %c0_56 = arith.constant 0 : index
    %80 = vector.load %arg5[%c80, %c0_56] : memref<640x128xf32, #tpu.memory_space<vmem>>, vector<8x128xf32>
    %c2_57 = arith.constant 2 : index
    %c0_58 = arith.constant 0 : index
    %c0_59 = arith.constant 0 : index
    %81 = vector.load %arg2[%c2_57, %c0_58, %c0_59] : memref<4x8x128xf32, #tpu.memory_space<vmem>>, vector<1x8x128xf32>
    %82 = vector.shape_cast %81 : vector<1x8x128xf32> to vector<8x128xf32>
    %83 = arith.mulf %80, %82 : vector<8x128xf32>
    %84 = arith.addf %79, %83 : vector<8x128xf32>
    %c88 = arith.constant 88 : index
    %c0_60 = arith.constant 0 : index
    %85 = vector.load %arg5[%c88, %c0_60] : memref<640x128xf32, #tpu.memory_space<vmem>>, vector<8x128xf32>
    %c3_61 = arith.constant 3 : index
    %c0_62 = arith.constant 0 : index
    %c0_63 = arith.constant 0 : index
    %86 = vector.load %arg2[%c3_61, %c0_62, %c0_63] : memref<4x8x128xf32, #tpu.memory_space<vmem>>, vector<1x8x128xf32>
    %87 = vector.shape_cast %86 : vector<1x8x128xf32> to vector<8x128xf32>
    %88 = arith.mulf %85, %87 : vector<8x128xf32>
    %89 = arith.addf %84, %88 : vector<8x128xf32>
    %c2_64 = arith.constant 2 : index
    %c0_65 = arith.constant 0 : index
    %c0_66 = arith.constant 0 : index
    %90 = vector.load %arg2[%c2_64, %c0_65, %c0_66] : memref<4x8x128xf32, #tpu.memory_space<vmem>>, vector<1x8x128xf32>
    %91 = vector.shape_cast %90 : vector<1x8x128xf32> to vector<8x128xf32>
    %92 = arith.mulf %89, %91 : vector<8x128xf32>
    %93 = arith.addf %68, %92 : vector<8x128xf32>
    %c536 = arith.constant 536 : index
    %c0_67 = arith.constant 0 : index
    %94 = vector.load %arg5[%c536, %c0_67] : memref<640x128xf32, #tpu.memory_space<vmem>>, vector<8x128xf32>
    %c96 = arith.constant 96 : index
    %c0_68 = arith.constant 0 : index
    %95 = vector.load %arg5[%c96, %c0_68] : memref<640x128xf32, #tpu.memory_space<vmem>>, vector<8x128xf32>
    %c0_69 = arith.constant 0 : index
    %c0_70 = arith.constant 0 : index
    %c0_71 = arith.constant 0 : index
    %96 = vector.load %arg2[%c0_69, %c0_70, %c0_71] : memref<4x8x128xf32, #tpu.memory_space<vmem>>, vector<1x8x128xf32>
    %97 = vector.shape_cast %96 : vector<1x8x128xf32> to vector<8x128xf32>
    %98 = arith.mulf %95, %97 : vector<8x128xf32>
    %99 = arith.addf %94, %98 : vector<8x128xf32>
    %c104 = arith.constant 104 : index
    %c0_72 = arith.constant 0 : index
    %100 = vector.load %arg5[%c104, %c0_72] : memref<640x128xf32, #tpu.memory_space<vmem>>, vector<8x128xf32>
    %c1_73 = arith.constant 1 : index
    %c0_74 = arith.constant 0 : index
    %c0_75 = arith.constant 0 : index
    %101 = vector.load %arg2[%c1_73, %c0_74, %c0_75] : memref<4x8x128xf32, #tpu.memory_space<vmem>>, vector<1x8x128xf32>
    %102 = vector.shape_cast %101 : vector<1x8x128xf32> to vector<8x128xf32>
    %103 = arith.mulf %100, %102 : vector<8x128xf32>
    %104 = arith.addf %99, %103 : vector<8x128xf32>
    %c112 = arith.constant 112 : index
    %c0_76 = arith.constant 0 : index
    %105 = vector.load %arg5[%c112, %c0_76] : memref<640x128xf32, #tpu.memory_space<vmem>>, vector<8x128xf32>
    %c2_77 = arith.constant 2 : index
    %c0_78 = arith.constant 0 : index
    %c0_79 = arith.constant 0 : index
    %106 = vector.load %arg2[%c2_77, %c0_78, %c0_79] : memref<4x8x128xf32, #tpu.memory_space<vmem>>, vector<1x8x128xf32>
    %107 = vector.shape_cast %106 : vector<1x8x128xf32> to vector<8x128xf32>
    %108 = arith.mulf %105, %107 : vector<8x128xf32>
    %109 = arith.addf %104, %108 : vector<8x128xf32>
    %c120 = arith.constant 120 : index
    %c0_80 = arith.constant 0 : index
    %110 = vector.load %arg5[%c120, %c0_80] : memref<640x128xf32, #tpu.memory_space<vmem>>, vector<8x128xf32>
    %c3_81 = arith.constant 3 : index
    %c0_82 = arith.constant 0 : index
    %c0_83 = arith.constant 0 : index
    %111 = vector.load %arg2[%c3_81, %c0_82, %c0_83] : memref<4x8x128xf32, #tpu.memory_space<vmem>>, vector<1x8x128xf32>
    %112 = vector.shape_cast %111 : vector<1x8x128xf32> to vector<8x128xf32>
    %113 = arith.mulf %110, %112 : vector<8x128xf32>
    %114 = arith.addf %109, %113 : vector<8x128xf32>
    %c3_84 = arith.constant 3 : index
    %c0_85 = arith.constant 0 : index
    %c0_86 = arith.constant 0 : index
    %115 = vector.load %arg2[%c3_84, %c0_85, %c0_86] : memref<4x8x128xf32, #tpu.memory_space<vmem>>, vector<1x8x128xf32>
    %116 = vector.shape_cast %115 : vector<1x8x128xf32> to vector<8x128xf32>
    %117 = arith.mulf %114, %116 : vector<8x128xf32>
    %118 = arith.addf %93, %117 : vector<8x128xf32>
    %c0_87 = arith.constant 0 : index
    %c0_88 = arith.constant 0 : index
    %119 = vector.load %arg4[%c0_87, %c0_88] : memref<32x128xf32, #tpu.memory_space<vmem>>, vector<8x128xf32>
    tpu.vector_store %arg4[%c0_87, %c0_88], %118 {strides = array<i32>} : memref<32x128xf32, #tpu.memory_space<vmem>>, vector<8x128xf32>,
    %cst_89 = arith.constant 0.000000e+00 : f32
    %120 = vector.broadcast %cst_89 : f32 to vector<8x128xf32>
    %c544 = arith.constant 544 : index
    %c0_90 = arith.constant 0 : index
    %121 = vector.load %arg5[%c544, %c0_90] : memref<640x128xf32, #tpu.memory_space<vmem>>, vector<8x128xf32>
    %c128 = arith.constant 128 : index
    %c0_91 = arith.constant 0 : index
    %122 = vector.load %arg5[%c128, %c0_91] : memref<640x128xf32, #tpu.memory_space<vmem>>, vector<8x128xf32>
    %c0_92 = arith.constant 0 : index
    %c0_93 = arith.constant 0 : index
    %c0_94 = arith.constant 0 : index
    %123 = vector.load %arg2[%c0_92, %c0_93, %c0_94] : memref<4x8x128xf32, #tpu.memory_space<vmem>>, vector<1x8x128xf32>
    %124 = vector.shape_cast %123 : vector<1x8x128xf32> to vector<8x128xf32>
    %125 = arith.mulf %122, %124 : vector<8x128xf32>
    %126 = arith.addf %121, %125 : vector<8x128xf32>
    %c136 = arith.constant 136 : index
    %c0_95 = arith.constant 0 : index
    %127 = vector.load %arg5[%c136, %c0_95] : memref<640x128xf32, #tpu.memory_space<vmem>>, vector<8x128xf32>
    %c1_96 = arith.constant 1 : index
    %c0_97 = arith.constant 0 : index
    %c0_98 = arith.constant 0 : index
    %128 = vector.load %arg2[%c1_96, %c0_97, %c0_98] : memref<4x8x128xf32, #tpu.memory_space<vmem>>, vector<1x8x128xf32>
    %129 = vector.shape_cast %128 : vector<1x8x128xf32> to vector<8x128xf32>
    %130 = arith.mulf %127, %129 : vector<8x128xf32>
    %131 = arith.addf %126, %130 : vector<8x128xf32>
    %c144 = arith.constant 144 : index
    %c0_99 = arith.constant 0 : index
    %132 = vector.load %arg5[%c144, %c0_99] : memref<640x128xf32, #tpu.memory_space<vmem>>, vector<8x128xf32>
    %c2_100 = arith.constant 2 : index
    %c0_101 = arith.constant 0 : index
    %c0_102 = arith.constant 0 : index
    %133 = vector.load %arg2[%c2_100, %c0_101, %c0_102] : memref<4x8x128xf32, #tpu.memory_space<vmem>>, vector<1x8x128xf32>
    %134 = vector.shape_cast %133 : vector<1x8x128xf32> to vector<8x128xf32>
    %135 = arith.mulf %132, %134 : vector<8x128xf32>
    %136 = arith.addf %131, %135 : vector<8x128xf32>
    %c152 = arith.constant 152 : index
    %c0_103 = arith.constant 0 : index
    %137 = vector.load %arg5[%c152, %c0_103] : memref<640x128xf32, #tpu.memory_space<vmem>>, vector<8x128xf32>
    %c3_104 = arith.constant 3 : index
    %c0_105 = arith.constant 0 : index
    %c0_106 = arith.constant 0 : index
    %138 = vector.load %arg2[%c3_104, %c0_105, %c0_106] : memref<4x8x128xf32, #tpu.memory_space<vmem>>, vector<1x8x128xf32>
    %139 = vector.shape_cast %138 : vector<1x8x128xf32> to vector<8x128xf32>
    %140 = arith.mulf %137, %139 : vector<8x128xf32>
    %141 = arith.addf %136, %140 : vector<8x128xf32>
    %c0_107 = arith.constant 0 : index
    %c0_108 = arith.constant 0 : index
    %c0_109 = arith.constant 0 : index
    %142 = vector.load %arg2[%c0_107, %c0_108, %c0_109] : memref<4x8x128xf32, #tpu.memory_space<vmem>>, vector<1x8x128xf32>
    %143 = vector.shape_cast %142 : vector<1x8x128xf32> to vector<8x128xf32>
    %144 = arith.mulf %141, %143 : vector<8x128xf32>
    %145 = arith.addf %120, %144 : vector<8x128xf32>
    %c552 = arith.constant 552 : index
    %c0_110 = arith.constant 0 : index
    %146 = vector.load %arg5[%c552, %c0_110] : memref<640x128xf32, #tpu.memory_space<vmem>>, vector<8x128xf32>
    %c160 = arith.constant 160 : index
    %c0_111 = arith.constant 0 : index
    %147 = vector.load %arg5[%c160, %c0_111] : memref<640x128xf32, #tpu.memory_space<vmem>>, vector<8x128xf32>
    %c0_112 = arith.constant 0 : index
    %c0_113 = arith.constant 0 : index
    %c0_114 = arith.constant 0 : index
    %148 = vector.load %arg2[%c0_112, %c0_113, %c0_114] : memref<4x8x128xf32, #tpu.memory_space<vmem>>, vector<1x8x128xf32>
    %149 = vector.shape_cast %148 : vector<1x8x128xf32> to vector<8x128xf32>
    %150 = arith.mulf %147, %149 : vector<8x128xf32>
    %151 = arith.addf %146, %150 : vector<8x128xf32>
    %c168 = arith.constant 168 : index
    %c0_115 = arith.constant 0 : index
    %152 = vector.load %arg5[%c168, %c0_115] : memref<640x128xf32, #tpu.memory_space<vmem>>, vector<8x128xf32>
    %c1_116 = arith.constant 1 : index
    %c0_117 = arith.constant 0 : index
    %c0_118 = arith.constant 0 : index
    %153 = vector.load %arg2[%c1_116, %c0_117, %c0_118] : memref<4x8x128xf32, #tpu.memory_space<vmem>>, vector<1x8x128xf32>
    %154 = vector.shape_cast %153 : vector<1x8x128xf32> to vector<8x128xf32>
    %155 = arith.mulf %152, %154 : vector<8x128xf32>
    %156 = arith.addf %151, %155 : vector<8x128xf32>
    %c176 = arith.constant 176 : index
    %c0_119 = arith.constant 0 : index
    %157 = vector.load %arg5[%c176, %c0_119] : memref<640x128xf32, #tpu.memory_space<vmem>>, vector<8x128xf32>
    %c2_120 = arith.constant 2 : index
    %c0_121 = arith.constant 0 : index
    %c0_122 = arith.constant 0 : index
    %158 = vector.load %arg2[%c2_120, %c0_121, %c0_122] : memref<4x8x128xf32, #tpu.memory_space<vmem>>, vector<1x8x128xf32>
    %159 = vector.shape_cast %158 : vector<1x8x128xf32> to vector<8x128xf32>
    %160 = arith.mulf %157, %159 : vector<8x128xf32>
    %161 = arith.addf %156, %160 : vector<8x128xf32>
    %c184 = arith.constant 184 : index
    %c0_123 = arith.constant 0 : index
    %162 = vector.load %arg5[%c184, %c0_123] : memref<640x128xf32, #tpu.memory_space<vmem>>, vector<8x128xf32>
    %c3_124 = arith.constant 3 : index
    %c0_125 = arith.constant 0 : index
    %c0_126 = arith.constant 0 : index
    %163 = vector.load %arg2[%c3_124, %c0_125, %c0_126] : memref<4x8x128xf32, #tpu.memory_space<vmem>>, vector<1x8x128xf32>
    %164 = vector.shape_cast %163 : vector<1x8x128xf32> to vector<8x128xf32>
    %165 = arith.mulf %162, %164 : vector<8x128xf32>
    %166 = arith.addf %161, %165 : vector<8x128xf32>
    %c1_127 = arith.constant 1 : index
    %c0_128 = arith.constant 0 : index
    %c0_129 = arith.constant 0 : index
    %167 = vector.load %arg2[%c1_127, %c0_128, %c0_129] : memref<4x8x128xf32, #tpu.memory_space<vmem>>, vector<1x8x128xf32>
    %168 = vector.shape_cast %167 : vector<1x8x128xf32> to vector<8x128xf32>
    %169 = arith.mulf %166, %168 : vector<8x128xf32>
    %170 = arith.addf %145, %169 : vector<8x128xf32>
    %c560 = arith.constant 560 : index
    %c0_130 = arith.constant 0 : index
    %171 = vector.load %arg5[%c560, %c0_130] : memref<640x128xf32, #tpu.memory_space<vmem>>, vector<8x128xf32>
    %c192 = arith.constant 192 : index
    %c0_131 = arith.constant 0 : index
    %172 = vector.load %arg5[%c192, %c0_131] : memref<640x128xf32, #tpu.memory_space<vmem>>, vector<8x128xf32>
    %c0_132 = arith.constant 0 : index
    %c0_133 = arith.constant 0 : index
    %c0_134 = arith.constant 0 : index
    %173 = vector.load %arg2[%c0_132, %c0_133, %c0_134] : memref<4x8x128xf32, #tpu.memory_space<vmem>>, vector<1x8x128xf32>
    %174 = vector.shape_cast %173 : vector<1x8x128xf32> to vector<8x128xf32>
    %175 = arith.mulf %172, %174 : vector<8x128xf32>
    %176 = arith.addf %171, %175 : vector<8x128xf32>
    %c200 = arith.constant 200 : index
    %c0_135 = arith.constant 0 : index
    %177 = vector.load %arg5[%c200, %c0_135] : memref<640x128xf32, #tpu.memory_space<vmem>>, vector<8x128xf32>
    %c1_136 = arith.constant 1 : index
    %c0_137 = arith.constant 0 : index
    %c0_138 = arith.constant 0 : index
    %178 = vector.load %arg2[%c1_136, %c0_137, %c0_138] : memref<4x8x128xf32, #tpu.memory_space<vmem>>, vector<1x8x128xf32>
    %179 = vector.shape_cast %178 : vector<1x8x128xf32> to vector<8x128xf32>
    %180 = arith.mulf %177, %179 : vector<8x128xf32>
    %181 = arith.addf %176, %180 : vector<8x128xf32>
    %c208 = arith.constant 208 : index
    %c0_139 = arith.constant 0 : index
    %182 = vector.load %arg5[%c208, %c0_139] : memref<640x128xf32, #tpu.memory_space<vmem>>, vector<8x128xf32>
    %c2_140 = arith.constant 2 : index
    %c0_141 = arith.constant 0 : index
    %c0_142 = arith.constant 0 : index
    %183 = vector.load %arg2[%c2_140, %c0_141, %c0_142] : memref<4x8x128xf32, #tpu.memory_space<vmem>>, vector<1x8x128xf32>
    %184 = vector.shape_cast %183 : vector<1x8x128xf32> to vector<8x128xf32>
    %185 = arith.mulf %182, %184 : vector<8x128xf32>
    %186 = arith.addf %181, %185 : vector<8x128xf32>
    %c216 = arith.constant 216 : index
    %c0_143 = arith.constant 0 : index
    %187 = vector.load %arg5[%c216, %c0_143] : memref<640x128xf32, #tpu.memory_space<vmem>>, vector<8x128xf32>
    %c3_144 = arith.constant 3 : index
    %c0_145 = arith.constant 0 : index
    %c0_146 = arith.constant 0 : index
    %188 = vector.load %arg2[%c3_144, %c0_145, %c0_146] : memref<4x8x128xf32, #tpu.memory_space<vmem>>, vector<1x8x128xf32>
    %189 = vector.shape_cast %188 : vector<1x8x128xf32> to vector<8x128xf32>
    %190 = arith.mulf %187, %189 : vector<8x128xf32>
    %191 = arith.addf %186, %190 : vector<8x128xf32>
    %c2_147 = arith.constant 2 : index
    %c0_148 = arith.constant 0 : index
    %c0_149 = arith.constant 0 : index
    %192 = vector.load %arg2[%c2_147, %c0_148, %c0_149] : memref<4x8x128xf32, #tpu.memory_space<vmem>>, vector<1x8x128xf32>
    %193 = vector.shape_cast %192 : vector<1x8x128xf32> to vector<8x128xf32>
    %194 = arith.mulf %191, %193 : vector<8x128xf32>
    %195 = arith.addf %170, %194 : vector<8x128xf32>
    %c568 = arith.constant 568 : index
    %c0_150 = arith.constant 0 : index
    %196 = vector.load %arg5[%c568, %c0_150] : memref<640x128xf32, #tpu.memory_space<vmem>>, vector<8x128xf32>
    %c224 = arith.constant 224 : index
    %c0_151 = arith.constant 0 : index
    %197 = vector.load %arg5[%c224, %c0_151] : memref<640x128xf32, #tpu.memory_space<vmem>>, vector<8x128xf32>
    %c0_152 = arith.constant 0 : index
    %c0_153 = arith.constant 0 : index
    %c0_154 = arith.constant 0 : index
    %198 = vector.load %arg2[%c0_152, %c0_153, %c0_154] : memref<4x8x128xf32, #tpu.memory_space<vmem>>, vector<1x8x128xf32>
    %199 = vector.shape_cast %198 : vector<1x8x128xf32> to vector<8x128xf32>
    %200 = arith.mulf %197, %199 : vector<8x128xf32>
    %201 = arith.addf %196, %200 : vector<8x128xf32>
    %c232 = arith.constant 232 : index
    %c0_155 = arith.constant 0 : index
    %202 = vector.load %arg5[%c232, %c0_155] : memref<640x128xf32, #tpu.memory_space<vmem>>, vector<8x128xf32>
    %c1_156 = arith.constant 1 : index
    %c0_157 = arith.constant 0 : index
    %c0_158 = arith.constant 0 : index
    %203 = vector.load %arg2[%c1_156, %c0_157, %c0_158] : memref<4x8x128xf32, #tpu.memory_space<vmem>>, vector<1x8x128xf32>
    %204 = vector.shape_cast %203 : vector<1x8x128xf32> to vector<8x128xf32>
    %205 = arith.mulf %202, %204 : vector<8x128xf32>
    %206 = arith.addf %201, %205 : vector<8x128xf32>
    %c240 = arith.constant 240 : index
    %c0_159 = arith.constant 0 : index
    %207 = vector.load %arg5[%c240, %c0_159] : memref<640x128xf32, #tpu.memory_space<vmem>>, vector<8x128xf32>
    %c2_160 = arith.constant 2 : index
    %c0_161 = arith.constant 0 : index
    %c0_162 = arith.constant 0 : index
    %208 = vector.load %arg2[%c2_160, %c0_161, %c0_162] : memref<4x8x128xf32, #tpu.memory_space<vmem>>, vector<1x8x128xf32>
    %209 = vector.shape_cast %208 : vector<1x8x128xf32> to vector<8x128xf32>
    %210 = arith.mulf %207, %209 : vector<8x128xf32>
    %211 = arith.addf %206, %210 : vector<8x128xf32>
    %c248 = arith.constant 248 : index
    %c0_163 = arith.constant 0 : index
    %212 = vector.load %arg5[%c248, %c0_163] : memref<640x128xf32, #tpu.memory_space<vmem>>, vector<8x128xf32>
    %c3_164 = arith.constant 3 : index
    %c0_165 = arith.constant 0 : index
    %c0_166 = arith.constant 0 : index
    %213 = vector.load %arg2[%c3_164, %c0_165, %c0_166] : memref<4x8x128xf32, #tpu.memory_space<vmem>>, vector<1x8x128xf32>
    %214 = vector.shape_cast %213 : vector<1x8x128xf32> to vector<8x128xf32>
    %215 = arith.mulf %212, %214 : vector<8x128xf32>
    %216 = arith.addf %211, %215 : vector<8x128xf32>
    %c3_167 = arith.constant 3 : index
    %c0_168 = arith.constant 0 : index
    %c0_169 = arith.constant 0 : index
    %217 = vector.load %arg2[%c3_167, %c0_168, %c0_169] : memref<4x8x128xf32, #tpu.memory_space<vmem>>, vector<1x8x128xf32>
    %218 = vector.shape_cast %217 : vector<1x8x128xf32> to vector<8x128xf32>
    %219 = arith.mulf %216, %218 : vector<8x128xf32>
    %220 = arith.addf %195, %219 : vector<8x128xf32>
    %c8_170 = arith.constant 8 : index
    %c0_171 = arith.constant 0 : index
    %221 = vector.load %arg4[%c8_170, %c0_171] : memref<32x128xf32, #tpu.memory_space<vmem>>, vector<8x128xf32>
    tpu.vector_store %arg4[%c8_170, %c0_171], %220 {strides = array<i32>} : memref<32x128xf32, #tpu.memory_space<vmem>>, vector<8x128xf32>,
    %cst_172 = arith.constant 0.000000e+00 : f32
    %222 = vector.broadcast %cst_172 : f32 to vector<8x128xf32>
    %c576 = arith.constant 576 : index
    %c0_173 = arith.constant 0 : index
    %223 = vector.load %arg5[%c576, %c0_173] : memref<640x128xf32, #tpu.memory_space<vmem>>, vector<8x128xf32>
    %c256 = arith.constant 256 : index
    %c0_174 = arith.constant 0 : index
    %224 = vector.load %arg5[%c256, %c0_174] : memref<640x128xf32, #tpu.memory_space<vmem>>, vector<8x128xf32>
    %c0_175 = arith.constant 0 : index
    %c0_176 = arith.constant 0 : index
    %c0_177 = arith.constant 0 : index
    %225 = vector.load %arg2[%c0_175, %c0_176, %c0_177] : memref<4x8x128xf32, #tpu.memory_space<vmem>>, vector<1x8x128xf32>
    %226 = vector.shape_cast %225 : vector<1x8x128xf32> to vector<8x128xf32>
    %227 = arith.mulf %224, %226 : vector<8x128xf32>
    %228 = arith.addf %223, %227 : vector<8x128xf32>
    %c264 = arith.constant 264 : index
    %c0_178 = arith.constant 0 : index
    %229 = vector.load %arg5[%c264, %c0_178] : memref<640x128xf32, #tpu.memory_space<vmem>>, vector<8x128xf32>
    %c1_179 = arith.constant 1 : index
    %c0_180 = arith.constant 0 : index
    %c0_181 = arith.constant 0 : index
    %230 = vector.load %arg2[%c1_179, %c0_180, %c0_181] : memref<4x8x128xf32, #tpu.memory_space<vmem>>, vector<1x8x128xf32>
    %231 = vector.shape_cast %230 : vector<1x8x128xf32> to vector<8x128xf32>
    %232 = arith.mulf %229, %231 : vector<8x128xf32>
    %233 = arith.addf %228, %232 : vector<8x128xf32>
    %c272 = arith.constant 272 : index
    %c0_182 = arith.constant 0 : index
    %234 = vector.load %arg5[%c272, %c0_182] : memref<640x128xf32, #tpu.memory_space<vmem>>, vector<8x128xf32>
    %c2_183 = arith.constant 2 : index
    %c0_184 = arith.constant 0 : index
    %c0_185 = arith.constant 0 : index
    %235 = vector.load %arg2[%c2_183, %c0_184, %c0_185] : memref<4x8x128xf32, #tpu.memory_space<vmem>>, vector<1x8x128xf32>
    %236 = vector.shape_cast %235 : vector<1x8x128xf32> to vector<8x128xf32>
    %237 = arith.mulf %234, %236 : vector<8x128xf32>
    %238 = arith.addf %233, %237 : vector<8x128xf32>
    %c280 = arith.constant 280 : index
    %c0_186 = arith.constant 0 : index
    %239 = vector.load %arg5[%c280, %c0_186] : memref<640x128xf32, #tpu.memory_space<vmem>>, vector<8x128xf32>
    %c3_187 = arith.constant 3 : index
    %c0_188 = arith.constant 0 : index
    %c0_189 = arith.constant 0 : index
    %240 = vector.load %arg2[%c3_187, %c0_188, %c0_189] : memref<4x8x128xf32, #tpu.memory_space<vmem>>, vector<1x8x128xf32>
    %241 = vector.shape_cast %240 : vector<1x8x128xf32> to vector<8x128xf32>
    %242 = arith.mulf %239, %241 : vector<8x128xf32>
    %243 = arith.addf %238, %242 : vector<8x128xf32>
    %c0_190 = arith.constant 0 : index
    %c0_191 = arith.constant 0 : index
    %c0_192 = arith.constant 0 : index
    %244 = vector.load %arg2[%c0_190, %c0_191, %c0_192] : memref<4x8x128xf32, #tpu.memory_space<vmem>>, vector<1x8x128xf32>
    %245 = vector.shape_cast %244 : vector<1x8x128xf32> to vector<8x128xf32>
    %246 = arith.mulf %243, %245 : vector<8x128xf32>
    %247 = arith.addf %222, %246 : vector<8x128xf32>
    %c584 = arith.constant 584 : index
    %c0_193 = arith.constant 0 : index
    %248 = vector.load %arg5[%c584, %c0_193] : memref<640x128xf32, #tpu.memory_space<vmem>>, vector<8x128xf32>
    %c288 = arith.constant 288 : index
    %c0_194 = arith.constant 0 : index
    %249 = vector.load %arg5[%c288, %c0_194] : memref<640x128xf32, #tpu.memory_space<vmem>>, vector<8x128xf32>
    %c0_195 = arith.constant 0 : index
    %c0_196 = arith.constant 0 : index
    %c0_197 = arith.constant 0 : index
    %250 = vector.load %arg2[%c0_195, %c0_196, %c0_197] : memref<4x8x128xf32, #tpu.memory_space<vmem>>, vector<1x8x128xf32>
    %251 = vector.shape_cast %250 : vector<1x8x128xf32> to vector<8x128xf32>
    %252 = arith.mulf %249, %251 : vector<8x128xf32>
    %253 = arith.addf %248, %252 : vector<8x128xf32>
    %c296 = arith.constant 296 : index
    %c0_198 = arith.constant 0 : index
    %254 = vector.load %arg5[%c296, %c0_198] : memref<640x128xf32, #tpu.memory_space<vmem>>, vector<8x128xf32>
    %c1_199 = arith.constant 1 : index
    %c0_200 = arith.constant 0 : index
    %c0_201 = arith.constant 0 : index
    %255 = vector.load %arg2[%c1_199, %c0_200, %c0_201] : memref<4x8x128xf32, #tpu.memory_space<vmem>>, vector<1x8x128xf32>
    %256 = vector.shape_cast %255 : vector<1x8x128xf32> to vector<8x128xf32>
    %257 = arith.mulf %254, %256 : vector<8x128xf32>
    %258 = arith.addf %253, %257 : vector<8x128xf32>
    %c304 = arith.constant 304 : index
    %c0_202 = arith.constant 0 : index
    %259 = vector.load %arg5[%c304, %c0_202] : memref<640x128xf32, #tpu.memory_space<vmem>>, vector<8x128xf32>
    %c2_203 = arith.constant 2 : index
    %c0_204 = arith.constant 0 : index
    %c0_205 = arith.constant 0 : index
    %260 = vector.load %arg2[%c2_203, %c0_204, %c0_205] : memref<4x8x128xf32, #tpu.memory_space<vmem>>, vector<1x8x128xf32>
    %261 = vector.shape_cast %260 : vector<1x8x128xf32> to vector<8x128xf32>
    %262 = arith.mulf %259, %261 : vector<8x128xf32>
    %263 = arith.addf %258, %262 : vector<8x128xf32>
    %c312 = arith.constant 312 : index
    %c0_206 = arith.constant 0 : index
    %264 = vector.load %arg5[%c312, %c0_206] : memref<640x128xf32, #tpu.memory_space<vmem>>, vector<8x128xf32>
    %c3_207 = arith.constant 3 : index
    %c0_208 = arith.constant 0 : index
    %c0_209 = arith.constant 0 : index
    %265 = vector.load %arg2[%c3_207, %c0_208, %c0_209] : memref<4x8x128xf32, #tpu.memory_space<vmem>>, vector<1x8x128xf32>
    %266 = vector.shape_cast %265 : vector<1x8x128xf32> to vector<8x128xf32>
    %267 = arith.mulf %264, %266 : vector<8x128xf32>
    %268 = arith.addf %263, %267 : vector<8x128xf32>
    %c1_210 = arith.constant 1 : index
    %c0_211 = arith.constant 0 : index
    %c0_212 = arith.constant 0 : index
    %269 = vector.load %arg2[%c1_210, %c0_211, %c0_212] : memref<4x8x128xf32, #tpu.memory_space<vmem>>, vector<1x8x128xf32>
    %270 = vector.shape_cast %269 : vector<1x8x128xf32> to vector<8x128xf32>
    %271 = arith.mulf %268, %270 : vector<8x128xf32>
    %272 = arith.addf %247, %271 : vector<8x128xf32>
    %c592 = arith.constant 592 : index
    %c0_213 = arith.constant 0 : index
    %273 = vector.load %arg5[%c592, %c0_213] : memref<640x128xf32, #tpu.memory_space<vmem>>, vector<8x128xf32>
    %c320 = arith.constant 320 : index
    %c0_214 = arith.constant 0 : index
    %274 = vector.load %arg5[%c320, %c0_214] : memref<640x128xf32, #tpu.memory_space<vmem>>, vector<8x128xf32>
    %c0_215 = arith.constant 0 : index
    %c0_216 = arith.constant 0 : index
    %c0_217 = arith.constant 0 : index
    %275 = vector.load %arg2[%c0_215, %c0_216, %c0_217] : memref<4x8x128xf32, #tpu.memory_space<vmem>>, vector<1x8x128xf32>
    %276 = vector.shape_cast %275 : vector<1x8x128xf32> to vector<8x128xf32>
    %277 = arith.mulf %274, %276 : vector<8x128xf32>
    %278 = arith.addf %273, %277 : vector<8x128xf32>
    %c328 = arith.constant 328 : index
    %c0_218 = arith.constant 0 : index
    %279 = vector.load %arg5[%c328, %c0_218] : memref<640x128xf32, #tpu.memory_space<vmem>>, vector<8x128xf32>
    %c1_219 = arith.constant 1 : index
    %c0_220 = arith.constant 0 : index
    %c0_221 = arith.constant 0 : index
    %280 = vector.load %arg2[%c1_219, %c0_220, %c0_221] : memref<4x8x128xf32, #tpu.memory_space<vmem>>, vector<1x8x128xf32>
    %281 = vector.shape_cast %280 : vector<1x8x128xf32> to vector<8x128xf32>
    %282 = arith.mulf %279, %281 : vector<8x128xf32>
    %283 = arith.addf %278, %282 : vector<8x128xf32>
    %c336 = arith.constant 336 : index
    %c0_222 = arith.constant 0 : index
    %284 = vector.load %arg5[%c336, %c0_222] : memref<640x128xf32, #tpu.memory_space<vmem>>, vector<8x128xf32>
    %c2_223 = arith.constant 2 : index
    %c0_224 = arith.constant 0 : index
    %c0_225 = arith.constant 0 : index
    %285 = vector.load %arg2[%c2_223, %c0_224, %c0_225] : memref<4x8x128xf32, #tpu.memory_space<vmem>>, vector<1x8x128xf32>
    %286 = vector.shape_cast %285 : vector<1x8x128xf32> to vector<8x128xf32>
    %287 = arith.mulf %284, %286 : vector<8x128xf32>
    %288 = arith.addf %283, %287 : vector<8x128xf32>
    %c344 = arith.constant 344 : index
    %c0_226 = arith.constant 0 : index
    %289 = vector.load %arg5[%c344, %c0_226] : memref<640x128xf32, #tpu.memory_space<vmem>>, vector<8x128xf32>
    %c3_227 = arith.constant 3 : index
    %c0_228 = arith.constant 0 : index
    %c0_229 = arith.constant 0 : index
    %290 = vector.load %arg2[%c3_227, %c0_228, %c0_229] : memref<4x8x128xf32, #tpu.memory_space<vmem>>, vector<1x8x128xf32>
    %291 = vector.shape_cast %290 : vector<1x8x128xf32> to vector<8x128xf32>
    %292 = arith.mulf %289, %291 : vector<8x128xf32>
    %293 = arith.addf %288, %292 : vector<8x128xf32>
    %c2_230 = arith.constant 2 : index
    %c0_231 = arith.constant 0 : index
    %c0_232 = arith.constant 0 : index
    %294 = vector.load %arg2[%c2_230, %c0_231, %c0_232] : memref<4x8x128xf32, #tpu.memory_space<vmem>>, vector<1x8x128xf32>
    %295 = vector.shape_cast %294 : vector<1x8x128xf32> to vector<8x128xf32>
    %296 = arith.mulf %293, %295 : vector<8x128xf32>
    %297 = arith.addf %272, %296 : vector<8x128xf32>
    %c600 = arith.constant 600 : index
    %c0_233 = arith.constant 0 : index
    %298 = vector.load %arg5[%c600, %c0_233] : memref<640x128xf32, #tpu.memory_space<vmem>>, vector<8x128xf32>
    %c352 = arith.constant 352 : index
    %c0_234 = arith.constant 0 : index
    %299 = vector.load %arg5[%c352, %c0_234] : memref<640x128xf32, #tpu.memory_space<vmem>>, vector<8x128xf32>
    %c0_235 = arith.constant 0 : index
    %c0_236 = arith.constant 0 : index
    %c0_237 = arith.constant 0 : index
    %300 = vector.load %arg2[%c0_235, %c0_236, %c0_237] : memref<4x8x128xf32, #tpu.memory_space<vmem>>, vector<1x8x128xf32>
    %301 = vector.shape_cast %300 : vector<1x8x128xf32> to vector<8x128xf32>
    %302 = arith.mulf %299, %301 : vector<8x128xf32>
    %303 = arith.addf %298, %302 : vector<8x128xf32>
    %c360 = arith.constant 360 : index
    %c0_238 = arith.constant 0 : index
    %304 = vector.load %arg5[%c360, %c0_238] : memref<640x128xf32, #tpu.memory_space<vmem>>, vector<8x128xf32>
    %c1_239 = arith.constant 1 : index
    %c0_240 = arith.constant 0 : index
    %c0_241 = arith.constant 0 : index
    %305 = vector.load %arg2[%c1_239, %c0_240, %c0_241] : memref<4x8x128xf32, #tpu.memory_space<vmem>>, vector<1x8x128xf32>
    %306 = vector.shape_cast %305 : vector<1x8x128xf32> to vector<8x128xf32>
    %307 = arith.mulf %304, %306 : vector<8x128xf32>
    %308 = arith.addf %303, %307 : vector<8x128xf32>
    %c368 = arith.constant 368 : index
    %c0_242 = arith.constant 0 : index
    %309 = vector.load %arg5[%c368, %c0_242] : memref<640x128xf32, #tpu.memory_space<vmem>>, vector<8x128xf32>
    %c2_243 = arith.constant 2 : index
    %c0_244 = arith.constant 0 : index
    %c0_245 = arith.constant 0 : index
    %310 = vector.load %arg2[%c2_243, %c0_244, %c0_245] : memref<4x8x128xf32, #tpu.memory_space<vmem>>, vector<1x8x128xf32>
    %311 = vector.shape_cast %310 : vector<1x8x128xf32> to vector<8x128xf32>
    %312 = arith.mulf %309, %311 : vector<8x128xf32>
    %313 = arith.addf %308, %312 : vector<8x128xf32>
    %c376 = arith.constant 376 : index
    %c0_246 = arith.constant 0 : index
    %314 = vector.load %arg5[%c376, %c0_246] : memref<640x128xf32, #tpu.memory_space<vmem>>, vector<8x128xf32>
    %c3_247 = arith.constant 3 : index
    %c0_248 = arith.constant 0 : index
    %c0_249 = arith.constant 0 : index
    %315 = vector.load %arg2[%c3_247, %c0_248, %c0_249] : memref<4x8x128xf32, #tpu.memory_space<vmem>>, vector<1x8x128xf32>
    %316 = vector.shape_cast %315 : vector<1x8x128xf32> to vector<8x128xf32>
    %317 = arith.mulf %314, %316 : vector<8x128xf32>
    %318 = arith.addf %313, %317 : vector<8x128xf32>
    %c3_250 = arith.constant 3 : index
    %c0_251 = arith.constant 0 : index
    %c0_252 = arith.constant 0 : index
    %319 = vector.load %arg2[%c3_250, %c0_251, %c0_252] : memref<4x8x128xf32, #tpu.memory_space<vmem>>, vector<1x8x128xf32>
    %320 = vector.shape_cast %319 : vector<1x8x128xf32> to vector<8x128xf32>
    %321 = arith.mulf %318, %320 : vector<8x128xf32>
    %322 = arith.addf %297, %321 : vector<8x128xf32>
    %c16_253 = arith.constant 16 : index
    %c0_254 = arith.constant 0 : index
    %323 = vector.load %arg4[%c16_253, %c0_254] : memref<32x128xf32, #tpu.memory_space<vmem>>, vector<8x128xf32>
    tpu.vector_store %arg4[%c16_253, %c0_254], %322 {strides = array<i32>} : memref<32x128xf32, #tpu.memory_space<vmem>>, vector<8x128xf32>,
    %cst_255 = arith.constant 0.000000e+00 : f32
    %324 = vector.broadcast %cst_255 : f32 to vector<8x128xf32>
    %c608 = arith.constant 608 : index
    %c0_256 = arith.constant 0 : index
    %325 = vector.load %arg5[%c608, %c0_256] : memref<640x128xf32, #tpu.memory_space<vmem>>, vector<8x128xf32>
    %c384 = arith.constant 384 : index
    %c0_257 = arith.constant 0 : index
    %326 = vector.load %arg5[%c384, %c0_257] : memref<640x128xf32, #tpu.memory_space<vmem>>, vector<8x128xf32>
    %c0_258 = arith.constant 0 : index
    %c0_259 = arith.constant 0 : index
    %c0_260 = arith.constant 0 : index
    %327 = vector.load %arg2[%c0_258, %c0_259, %c0_260] : memref<4x8x128xf32, #tpu.memory_space<vmem>>, vector<1x8x128xf32>
    %328 = vector.shape_cast %327 : vector<1x8x128xf32> to vector<8x128xf32>
    %329 = arith.mulf %326, %328 : vector<8x128xf32>
    %330 = arith.addf %325, %329 : vector<8x128xf32>
    %c392 = arith.constant 392 : index
    %c0_261 = arith.constant 0 : index
    %331 = vector.load %arg5[%c392, %c0_261] : memref<640x128xf32, #tpu.memory_space<vmem>>, vector<8x128xf32>
    %c1_262 = arith.constant 1 : index
    %c0_263 = arith.constant 0 : index
    %c0_264 = arith.constant 0 : index
    %332 = vector.load %arg2[%c1_262, %c0_263, %c0_264] : memref<4x8x128xf32, #tpu.memory_space<vmem>>, vector<1x8x128xf32>
    %333 = vector.shape_cast %332 : vector<1x8x128xf32> to vector<8x128xf32>
    %334 = arith.mulf %331, %333 : vector<8x128xf32>
    %335 = arith.addf %330, %334 : vector<8x128xf32>
    %c400 = arith.constant 400 : index
    %c0_265 = arith.constant 0 : index
    %336 = vector.load %arg5[%c400, %c0_265] : memref<640x128xf32, #tpu.memory_space<vmem>>, vector<8x128xf32>
    %c2_266 = arith.constant 2 : index
    %c0_267 = arith.constant 0 : index
    %c0_268 = arith.constant 0 : index
    %337 = vector.load %arg2[%c2_266, %c0_267, %c0_268] : memref<4x8x128xf32, #tpu.memory_space<vmem>>, vector<1x8x128xf32>
    %338 = vector.shape_cast %337 : vector<1x8x128xf32> to vector<8x128xf32>
    %339 = arith.mulf %336, %338 : vector<8x128xf32>
    %340 = arith.addf %335, %339 : vector<8x128xf32>
    %c408 = arith.constant 408 : index
    %c0_269 = arith.constant 0 : index
    %341 = vector.load %arg5[%c408, %c0_269] : memref<640x128xf32, #tpu.memory_space<vmem>>, vector<8x128xf32>
    %c3_270 = arith.constant 3 : index
    %c0_271 = arith.constant 0 : index
    %c0_272 = arith.constant 0 : index
    %342 = vector.load %arg2[%c3_270, %c0_271, %c0_272] : memref<4x8x128xf32, #tpu.memory_space<vmem>>, vector<1x8x128xf32>
    %343 = vector.shape_cast %342 : vector<1x8x128xf32> to vector<8x128xf32>
    %344 = arith.mulf %341, %343 : vector<8x128xf32>
    %345 = arith.addf %340, %344 : vector<8x128xf32>
    %c0_273 = arith.constant 0 : index
    %c0_274 = arith.constant 0 : index
    %c0_275 = arith.constant 0 : index
    %346 = vector.load %arg2[%c0_273, %c0_274, %c0_275] : memref<4x8x128xf32, #tpu.memory_space<vmem>>, vector<1x8x128xf32>
    %347 = vector.shape_cast %346 : vector<1x8x128xf32> to vector<8x128xf32>
    %348 = arith.mulf %345, %347 : vector<8x128xf32>
    %349 = arith.addf %324, %348 : vector<8x128xf32>
    %c616 = arith.constant 616 : index
    %c0_276 = arith.constant 0 : index
    %350 = vector.load %arg5[%c616, %c0_276] : memref<640x128xf32, #tpu.memory_space<vmem>>, vector<8x128xf32>
    %c416 = arith.constant 416 : index
    %c0_277 = arith.constant 0 : index
    %351 = vector.load %arg5[%c416, %c0_277] : memref<640x128xf32, #tpu.memory_space<vmem>>, vector<8x128xf32>
    %c0_278 = arith.constant 0 : index
    %c0_279 = arith.constant 0 : index
    %c0_280 = arith.constant 0 : index
    %352 = vector.load %arg2[%c0_278, %c0_279, %c0_280] : memref<4x8x128xf32, #tpu.memory_space<vmem>>, vector<1x8x128xf32>
    %353 = vector.shape_cast %352 : vector<1x8x128xf32> to vector<8x128xf32>
    %354 = arith.mulf %351, %353 : vector<8x128xf32>
    %355 = arith.addf %350, %354 : vector<8x128xf32>
    %c424 = arith.constant 424 : index
    %c0_281 = arith.constant 0 : index
    %356 = vector.load %arg5[%c424, %c0_281] : memref<640x128xf32, #tpu.memory_space<vmem>>, vector<8x128xf32>
    %c1_282 = arith.constant 1 : index
    %c0_283 = arith.constant 0 : index
    %c0_284 = arith.constant 0 : index
    %357 = vector.load %arg2[%c1_282, %c0_283, %c0_284] : memref<4x8x128xf32, #tpu.memory_space<vmem>>, vector<1x8x128xf32>
    %358 = vector.shape_cast %357 : vector<1x8x128xf32> to vector<8x128xf32>
    %359 = arith.mulf %356, %358 : vector<8x128xf32>
    %360 = arith.addf %355, %359 : vector<8x128xf32>
    %c432 = arith.constant 432 : index
    %c0_285 = arith.constant 0 : index
    %361 = vector.load %arg5[%c432, %c0_285] : memref<640x128xf32, #tpu.memory_space<vmem>>, vector<8x128xf32>
    %c2_286 = arith.constant 2 : index
    %c0_287 = arith.constant 0 : index
    %c0_288 = arith.constant 0 : index
    %362 = vector.load %arg2[%c2_286, %c0_287, %c0_288] : memref<4x8x128xf32, #tpu.memory_space<vmem>>, vector<1x8x128xf32>
    %363 = vector.shape_cast %362 : vector<1x8x128xf32> to vector<8x128xf32>
    %364 = arith.mulf %361, %363 : vector<8x128xf32>
    %365 = arith.addf %360, %364 : vector<8x128xf32>
    %c440 = arith.constant 440 : index
    %c0_289 = arith.constant 0 : index
    %366 = vector.load %arg5[%c440, %c0_289] : memref<640x128xf32, #tpu.memory_space<vmem>>, vector<8x128xf32>
    %c3_290 = arith.constant 3 : index
    %c0_291 = arith.constant 0 : index
    %c0_292 = arith.constant 0 : index
    %367 = vector.load %arg2[%c3_290, %c0_291, %c0_292] : memref<4x8x128xf32, #tpu.memory_space<vmem>>, vector<1x8x128xf32>
    %368 = vector.shape_cast %367 : vector<1x8x128xf32> to vector<8x128xf32>
    %369 = arith.mulf %366, %368 : vector<8x128xf32>
    %370 = arith.addf %365, %369 : vector<8x128xf32>
    %c1_293 = arith.constant 1 : index
    %c0_294 = arith.constant 0 : index
    %c0_295 = arith.constant 0 : index
    %371 = vector.load %arg2[%c1_293, %c0_294, %c0_295] : memref<4x8x128xf32, #tpu.memory_space<vmem>>, vector<1x8x128xf32>
    %372 = vector.shape_cast %371 : vector<1x8x128xf32> to vector<8x128xf32>
    %373 = arith.mulf %370, %372 : vector<8x128xf32>
    %374 = arith.addf %349, %373 : vector<8x128xf32>
    %c624 = arith.constant 624 : index
    %c0_296 = arith.constant 0 : index
    %375 = vector.load %arg5[%c624, %c0_296] : memref<640x128xf32, #tpu.memory_space<vmem>>, vector<8x128xf32>
    %c448 = arith.constant 448 : index
    %c0_297 = arith.constant 0 : index
    %376 = vector.load %arg5[%c448, %c0_297] : memref<640x128xf32, #tpu.memory_space<vmem>>, vector<8x128xf32>
    %c0_298 = arith.constant 0 : index
    %c0_299 = arith.constant 0 : index
    %c0_300 = arith.constant 0 : index
    %377 = vector.load %arg2[%c0_298, %c0_299, %c0_300] : memref<4x8x128xf32, #tpu.memory_space<vmem>>, vector<1x8x128xf32>
    %378 = vector.shape_cast %377 : vector<1x8x128xf32> to vector<8x128xf32>
    %379 = arith.mulf %376, %378 : vector<8x128xf32>
    %380 = arith.addf %375, %379 : vector<8x128xf32>
    %c456 = arith.constant 456 : index
    %c0_301 = arith.constant 0 : index
    %381 = vector.load %arg5[%c456, %c0_301] : memref<640x128xf32, #tpu.memory_space<vmem>>, vector<8x128xf32>
    %c1_302 = arith.constant 1 : index
    %c0_303 = arith.constant 0 : index
    %c0_304 = arith.constant 0 : index
    %382 = vector.load %arg2[%c1_302, %c0_303, %c0_304] : memref<4x8x128xf32, #tpu.memory_space<vmem>>, vector<1x8x128xf32>
    %383 = vector.shape_cast %382 : vector<1x8x128xf32> to vector<8x128xf32>
    %384 = arith.mulf %381, %383 : vector<8x128xf32>
    %385 = arith.addf %380, %384 : vector<8x128xf32>
    %c464 = arith.constant 464 : index
    %c0_305 = arith.constant 0 : index
    %386 = vector.load %arg5[%c464, %c0_305] : memref<640x128xf32, #tpu.memory_space<vmem>>, vector<8x128xf32>
    %c2_306 = arith.constant 2 : index
    %c0_307 = arith.constant 0 : index
    %c0_308 = arith.constant 0 : index
    %387 = vector.load %arg2[%c2_306, %c0_307, %c0_308] : memref<4x8x128xf32, #tpu.memory_space<vmem>>, vector<1x8x128xf32>
    %388 = vector.shape_cast %387 : vector<1x8x128xf32> to vector<8x128xf32>
    %389 = arith.mulf %386, %388 : vector<8x128xf32>
    %390 = arith.addf %385, %389 : vector<8x128xf32>
    %c472 = arith.constant 472 : index
    %c0_309 = arith.constant 0 : index
    %391 = vector.load %arg5[%c472, %c0_309] : memref<640x128xf32, #tpu.memory_space<vmem>>, vector<8x128xf32>
    %c3_310 = arith.constant 3 : index
    %c0_311 = arith.constant 0 : index
    %c0_312 = arith.constant 0 : index
    %392 = vector.load %arg2[%c3_310, %c0_311, %c0_312] : memref<4x8x128xf32, #tpu.memory_space<vmem>>, vector<1x8x128xf32>
    %393 = vector.shape_cast %392 : vector<1x8x128xf32> to vector<8x128xf32>
    %394 = arith.mulf %391, %393 : vector<8x128xf32>
    %395 = arith.addf %390, %394 : vector<8x128xf32>
    %c2_313 = arith.constant 2 : index
    %c0_314 = arith.constant 0 : index
    %c0_315 = arith.constant 0 : index
    %396 = vector.load %arg2[%c2_313, %c0_314, %c0_315] : memref<4x8x128xf32, #tpu.memory_space<vmem>>, vector<1x8x128xf32>
    %397 = vector.shape_cast %396 : vector<1x8x128xf32> to vector<8x128xf32>
    %398 = arith.mulf %395, %397 : vector<8x128xf32>
    %399 = arith.addf %374, %398 : vector<8x128xf32>
    %c632 = arith.constant 632 : index
    %c0_316 = arith.constant 0 : index
    %400 = vector.load %arg5[%c632, %c0_316] : memref<640x128xf32, #tpu.memory_space<vmem>>, vector<8x128xf32>
    %c480 = arith.constant 480 : index
    %c0_317 = arith.constant 0 : index
    %401 = vector.load %arg5[%c480, %c0_317] : memref<640x128xf32, #tpu.memory_space<vmem>>, vector<8x128xf32>
    %c0_318 = arith.constant 0 : index
    %c0_319 = arith.constant 0 : index
    %c0_320 = arith.constant 0 : index
    %402 = vector.load %arg2[%c0_318, %c0_319, %c0_320] : memref<4x8x128xf32, #tpu.memory_space<vmem>>, vector<1x8x128xf32>
    %403 = vector.shape_cast %402 : vector<1x8x128xf32> to vector<8x128xf32>
    %404 = arith.mulf %401, %403 : vector<8x128xf32>
    %405 = arith.addf %400, %404 : vector<8x128xf32>
    %c488 = arith.constant 488 : index
    %c0_321 = arith.constant 0 : index
    %406 = vector.load %arg5[%c488, %c0_321] : memref<640x128xf32, #tpu.memory_space<vmem>>, vector<8x128xf32>
    %c1_322 = arith.constant 1 : index
    %c0_323 = arith.constant 0 : index
    %c0_324 = arith.constant 0 : index
    %407 = vector.load %arg2[%c1_322, %c0_323, %c0_324] : memref<4x8x128xf32, #tpu.memory_space<vmem>>, vector<1x8x128xf32>
    %408 = vector.shape_cast %407 : vector<1x8x128xf32> to vector<8x128xf32>
    %409 = arith.mulf %406, %408 : vector<8x128xf32>
    %410 = arith.addf %405, %409 : vector<8x128xf32>
    %c496 = arith.constant 496 : index
    %c0_325 = arith.constant 0 : index
    %411 = vector.load %arg5[%c496, %c0_325] : memref<640x128xf32, #tpu.memory_space<vmem>>, vector<8x128xf32>
    %c2_326 = arith.constant 2 : index
    %c0_327 = arith.constant 0 : index
    %c0_328 = arith.constant 0 : index
    %412 = vector.load %arg2[%c2_326, %c0_327, %c0_328] : memref<4x8x128xf32, #tpu.memory_space<vmem>>, vector<1x8x128xf32>
    %413 = vector.shape_cast %412 : vector<1x8x128xf32> to vector<8x128xf32>
    %414 = arith.mulf %411, %413 : vector<8x128xf32>
    %415 = arith.addf %410, %414 : vector<8x128xf32>
    %c504 = arith.constant 504 : index
    %c0_329 = arith.constant 0 : index
    %416 = vector.load %arg5[%c504, %c0_329] : memref<640x128xf32, #tpu.memory_space<vmem>>, vector<8x128xf32>
    %c3_330 = arith.constant 3 : index
    %c0_331 = arith.constant 0 : index
    %c0_332 = arith.constant 0 : index
    %417 = vector.load %arg2[%c3_330, %c0_331, %c0_332] : memref<4x8x128xf32, #tpu.memory_space<vmem>>, vector<1x8x128xf32>
    %418 = vector.shape_cast %417 : vector<1x8x128xf32> to vector<8x128xf32>
    %419 = arith.mulf %416, %418 : vector<8x128xf32>
    %420 = arith.addf %415, %419 : vector<8x128xf32>
    %c3_333 = arith.constant 3 : index
    %c0_334 = arith.constant 0 : index
    %c0_335 = arith.constant 0 : index
    %421 = vector.load %arg2[%c3_333, %c0_334, %c0_335] : memref<4x8x128xf32, #tpu.memory_space<vmem>>, vector<1x8x128xf32>
    %422 = vector.shape_cast %421 : vector<1x8x128xf32> to vector<8x128xf32>
    %423 = arith.mulf %420, %422 : vector<8x128xf32>
    %424 = arith.addf %399, %423 : vector<8x128xf32>
    %c24_336 = arith.constant 24 : index
    %c0_337 = arith.constant 0 : index
    %425 = vector.load %arg4[%c24_336, %c0_337] : memref<32x128xf32, #tpu.memory_space<vmem>>, vector<8x128xf32>
    tpu.vector_store %arg4[%c24_336, %c0_337], %424 {strides = array<i32>} : memref<32x128xf32, #tpu.memory_space<vmem>>, vector<8x128xf32>,
    return
  }
  func.func @transform_0(%arg0: i32) -> (i32, i32) {
    %c0_i32 = arith.constant 0 : i32
    %c0_i32_0 = arith.constant 0 : i32
    %c0_i32_1 = arith.constant 0 : i32
    return %c0_i32, %c0_i32_0 : i32, i32
  }
  func.func @transform_1(%arg0: i32) -> (i32, i32, i32) {
    %c0_i32 = arith.constant 0 : i32
    %c0_i32_0 = arith.constant 0 : i32
    %c0_i32_1 = arith.constant 0 : i32
    return %c0_i32, %c0_i32_0, %arg0 : i32, i32, i32
  }
  func.func @transform_2(%arg0: i32) -> (i32, i32) {
    %c0_i32 = arith.constant 0 : i32
    %c0_i32_0 = arith.constant 0 : i32
    return %c0_i32, %arg0 : i32, i32
  }
  func.func @transform_3(%arg0: i32) -> (i32, i32) {
    %c0_i32 = arith.constant 0 : i32
    %c0_i32_0 = arith.constant 0 : i32
    return %c0_i32, %arg0 : i32, i32
  }
}

</mosaic_0001>

<bundles_post_ra>
// kernel: tpu_custom_call.1
= control target key start
LH: loop header
LB: loop body
LE: loop exit
PB: predicated region body
PF: predicated region fallthrough
CT: control target
= control target key end

     0   :  { %8 = vsyncpa [#allocation6], 0  ;;  %s4278_s0 = inlined_call_operand.vmem [shape: bf16[640,336], index: 0, kind: input, shape index: {}]   ;;  %s4279_s1 = inlined_call_operand.vmem [shape: f32[4,8,256], index: 1, kind: input, shape index: {}]   ;;  %s4280_s2 = inlined_call_operand.vmem [shape: f32[16,256], index: 2, kind: input, shape index: {}]   ;;  %s4281_s3 = inlined_call_operand.hbm [shape: f32[32,256], index: 3, kind: output, shape index: {}]  }
   0x1   :  { %10 = vsyncpa [#allocation6 + $0x1], 0  ;;  %s3050_s12 = smov 0   ;;  %s3052_s13 = smov 0  }
   0x2   :  { %s3054_s14 = smov 0   ;;  %s3056_s15 = smov 0  }
   0x3 LB: > { %s2403_s16 = sadd.s32 4294967295, %s3022_s15   ;;  %s2404_s17 = sadd.s32 4294967294, %s3022_s15   ;;  %s3022_s15 = sphi %s3056_s15, %s4390_s15   ;;  %s3018_s14 = sphi %s3054_s14, %s4389_s14   ;;  %s3014_s13 = sphi %s3052_s13, %s4388_s13   ;;  %s3010_s12 = sphi %s3050_s12, %s4387_s12  }
   0x4   : > { %s3073_s18 = sadd.s32 1, %s3022_s15   ;;  %s44_s19 = sadd.s32 1, %s3018_s14 }
   0x5   : > { %s41_s20 = ssub.s32 %s3022_s15, %s3073_s18  ;;  %p51_p0 = scmp.ne.s32.totalorder %s3018_s14, %s3014_s13 }
   0x6   : > { %p42_p1 = scmp.eq.s32.totalorder %s41_s20, 0  ;;  %p52_p2 = scmp.eq.s32.totalorder %s3022_s15, 0 }
   0x7   : > { %p107_p3 = scmp.eq.s32.totalorder %s2403_s16, 1  ;;  %p112_p4 = scmp.ne.s32.totalorder %s3014_s13, %s3010_s12 }
   0x8   : > { %s3086_s21 = scalar_select %p42_p1, %s3018_s14, %s44_s19  }
   0x9   : > { %p3088_p5 = por %p52_p2, %p51_p0  ;;  %p3092_p6 = por %p107_p3, %p51_p0 }
   0xa   : > { %p113_p7 = scmp.eq.s32.totalorder %s2404_s17, 1  ;;  %p2406_p9 = scmp.ge.s32.totalorder %s3022_s15, 2 }
   0xc   : > { %p3096_p8 = por %p113_p7, %p112_p4  ;;  %132 = sbr.rel (%p2406_p9) target bundleno = 28 (0x1c), region = 20 }
  0x11   : > { %135 = sbr.rel (!%p3088_p5) target bundleno = 23 (0x17), region = 24  ;;  %s137_s25 = sand.u32 (%p3088_p5), 1, %s3018_s14  }
  0x12   : > { %s2408_s26 = sshll.u32 (%p3088_p5), %s3022_s15, 3  ;;  %s2407_s27 = sshll.u32 (%p3088_p5), %s137_s25, 5 }
  0x13   : > { %s141_s30 = scalar_lea.vmem (%p3088_p5), %s4279_s1, %s2408_s26  ;;  %s139_s4 = scalar_lea.vmem (%p3088_p5), [#allocation3], %s2407_s27 }
  0x14   : > { %v176_v0 = vld [vmem:[%s141_s30] sm:$0xff] (%p3088_p5)  ;;  %v178_v1 = vld [vmem:[%s141_s30 + $0x10] sm:$0xff] (%p3088_p5) }
  0x15   : > { %v180_v2 = vld [vmem:[%s141_s30 + $0x20] sm:$0xff] (%p3088_p5)  ;;  %177 = vst [vmem:[%s139_s4] sm:$0xff] (%p3088_p5), %v176_v0  ;;  %179 = vst [vmem:[%s139_s4 + $0x8] sm:$0xff] (%p3088_p5), %v178_v1  ;;  %v182_v3 = vld [vmem:[%s141_s30 + $0x30] sm:$0xff] (%p3088_p5) }
  0x16   : > { %181 = vst [vmem:[%s139_s4 + $0x10] sm:$0xff] %v180_v2  ;;  %183 = vst [vmem:[%s139_s4 + $0x18] sm:$0xff] %v182_v3 }
  0x17 PF: > { %189 = sbr.rel (!%p3088_p5) target bundleno = 28 (0x1c), region = 62  ;;  %s191_s5 = sand.u32 (%p3088_p5), 1, %s3018_s14  }
  0x18   : > { %s2410_s6 = sshll.u32 (%p3088_p5), %s3022_s15, 3  ;;  %s2409_s7 = sshll.u32 (%p3088_p5), %s191_s5, 4 }
  0x19   : > { %s195_s10 = scalar_lea.vmem (%p3088_p5), %s4280_s2, %s2410_s6  ;;  %s193_s11 = scalar_lea.vmem (%p3088_p5), [#allocation4], %s2409_s7 }
  0x1a   : > { %v226_v4 = vld [vmem:[%s195_s10] sm:$0xff] (%p3088_p5)  ;;  %v228_v5 = vld [vmem:[%s195_s10 + $0x10] sm:$0xff] (%p3088_p5) }
  0x1b   : > { %227 = vst [vmem:[%s193_s11] sm:$0xff] (%p3088_p5), %v226_v4  ;;  %229 = vst [vmem:[%s193_s11 + $0x8] sm:$0xff] (%p3088_p5), %v228_v5 }
  0x1c PF: > { %p2411_p10 = scmp.ge.s32.totalorder %s3022_s15, 1  ;;  %p234_p11 = scmp.lt.s32.totalorder %s3022_s15, 3 }
  0x1e   : > { %p235_p12 = pnand %p2411_p10, %p234_p11 }
  0x20   : > { %238 = sbr.rel (%p235_p12) target bundleno = 582 (0x246), region = 100 }
  0x25   : > { %s3120_s17 = sand.u32 1, %s3014_s13   ;;  %v286_v6 = vlaneseq  ;;  %v3024_v7 = vmov 0   ;;  %v3025_v8 = vmov 1966171168   ;;  %v2804_v10 = vld [vmem:[%s4278_s0 + $0x4] ss:$12 sps:$4 sm:$0xff]  }
  0x26   : > { %1256 = vmatprep.subr.bf16.mxu0 %v3024_v7  ;;  %2726 = vmatprep.subr.bf16.mxu1 %v3024_v7  ;;  %s2413_s19 = sshll.u32 %s3120_s17, 4  ;;  %v284_v9 = vunpack.c.l.s4 %v3025_v8  ;;  %s2412_s25 = sshll.u32 %s3120_s17, 5  ;;  %v2807_v15 = vld [vmem:[%s4278_s0 + $0x2d4] ss:$12 sps:$4 sm:$0xff]   ;;  %v2805_v3 = vld [vmem:[%s4278_s0 + $0x2d0] ss:$12 sps:$4 sm:$0xff]  }
  0x27   : > { %v287_v11 = vshrl.u32 %v286_v6, 7  ;;  %1288 = vmatprep.mubr.bf16.mxu0 %v2804_v10  ;;  %s250_s26 = scalar_lea.vmem [#allocation4], %s2413_s19  ;;  %1528 = vmatprep.mubr.bf16.mxu1 %v2807_v15  ;;  %s3137_s29 = scalar_lea.vmem [#allocation3], %s2412_s25  ;;  %v2802_v2 = vld [vmem:[%s4278_s0] ss:$12 sps:$4 sm:$0xff]   ;;  %vm1135_vm0 = vcmask 654336  }
  0x28   : > { %v285_v12 = vunpack.c.0.s8 %v284_v9  ;;  %v3129_v13 = vld [vmem:[%s250_s26] sm:$0xff]  ;;  %v277_v20 = vld [vmem:[%s3137_s29 + $0x8] sm:$0xff]  ;;  %v279_v29 = vld [vmem:[%s3137_s29 + $0x18] sm:$0xff]  ;;  %s3026_s4 = smov [#allocation5]  }
  0x29   : > { %v308_v17 = vsub.s32 0, %v287_v11  ;;  %v276_v19 = vld [vmem:[%s3137_s29] sm:$0xff]  ;;  %v3141_v23 = vld [vmem:[%s250_s26 + $0x8] sm:$0xff]  ;;  %v278_v27 = vld [vmem:[%s3137_s29 + $0x10] sm:$0xff]  ;;  %s2966_s5 = sshll.u32 %s3026_s4, 4  ;;  %s2967_s5 = int_to_ptr.vmem [resolvable:$false] %s2966_s5 }
  0x2a   : > { %v288_v14 = vsub.s32 %v285_v12, %v287_v11  ;;  %v3147_v32 = vpack.c.bf16 %v3141_v23, %v3129_v13  ;;  %v2810_v9 = vld [vmem:[%s4278_s0 + $0x2ec] ss:$12 sps:$4 sm:$0xff]   ;;  %s2968_s6 = scalar_lea.vmem %s2967_s5, 1024 }
  0x2c   : > { %v289_v16 = vrot.slane %v3129_v13, %v288_v14  ;;  %v352_v59 = vunpack.c.l.bf16 %v3147_v32  ;;  %v353_v60 = vunpack.c.h.bf16 %v3147_v32 }
  0x2e   : > { %v297_v18 = vrot.slane %v289_v16, %v288_v14  ;;  %v290_v24 = vcombine.high %v289_v16, %v289_v16  ;;  %v366_v61 = vsub.f32 %v3129_v13, %v352_v59  ;;  %v367_v62 = vsub.f32 %v3141_v23, %v353_v60  ;;  %v2816_v23 = vld [vmem:[%s4278_s0 + $0x304] ss:$12 sps:$4 sm:$0xff]   ;;  %v2864_v59 = vld [vmem:[%s4278_s0 + $0x8] ss:$12 sps:$4 sm:$0xff]  }
  0x2f   : > { %v2865_v60 = vld [vmem:[%s4278_s0 + $0xf0] ss:$12 sps:$4 sm:$0xff]  }
  0x30   : > { %v309_v21 = vrot.slane %v297_v18, %v308_v17  ;;  %v305_v22 = vcombine.high %v297_v18, %v297_v18  ;;  %v304_v31 = vrot.slane %v290_v24, %v288_v14  ;;  %v374_v1 = vpack.c.bf16 %v367_v62, %v366_v61  ;;  %v2866_v61 = vld [vmem:[%s4278_s0 + $0x20] ss:$12 sps:$4 sm:$0xff]  }
  0x31   : > { %v2867_v62 = vld [vmem:[%s4278_s0 + $0x10c] ss:$12 sps:$4 sm:$0xff]  }
  0x32   : > { %v321_v25 = vmul.f32 %v309_v21, %v276_v19  ;;  %v322_v26 = vmul.f32 %v309_v21, %v277_v20  ;;  %v317_v28 = vrot.slane %v305_v22, %v308_v17  ;;  %v313_v35 = vrot.slane %v304_v31, %v308_v17  ;;  %v2814_v22 = vld [vmem:[%s4278_s0 + $0x34] ss:$12 sps:$4 sm:$0xff]   ;;  %v2822_v31 = vld [vmem:[%s4278_s0 + $0x31c] ss:$12 sps:$4 sm:$0xff]  }
  0x33   : > { %v323_v45 = vmul.f32 %v309_v21, %v278_v27  ;;  %v324_v46 = vmul.f32 %v309_v21, %v279_v29  ;;  %v2813_v21 = vld [vmem:[%s4278_s0 + $0x2e8] ss:$12 sps:$4 sm:$0xff]  }
  0x34   : > { %v333_v30 = vpack.c.bf16 %v322_v26, %v321_v25  ;;  %v3149_v33 = vmul.f32 %v317_v28, %v278_v27  ;;  %v3151_v34 = vmul.f32 %v317_v28, %v279_v29  ;;  %v3161_v37 = vmul.f32 %v317_v28, %v276_v19 }
  0x35   : > { %v3163_v38 = vmul.f32 %v317_v28, %v277_v20  ;;  %v3173_v40 = vmul.f32 %v313_v35, %v278_v27  ;;  %v3175_v41 = vmul.f32 %v313_v35, %v279_v29  ;;  %v3185_v43 = vmul.f32 %v313_v35, %v276_v19  ;;  %v2818_v28 = vld [vmem:[%s4278_s0 + $0x30] ss:$12 sps:$4 sm:$0xff]   ;;  %v2819_v29 = vld [vmem:[%s4278_s0 + $0x300] ss:$12 sps:$4 sm:$0xff]  }
  0x36   : > { %1257 = vmatpush1.bf16.msra.mxu0 %v333_v30  ;;  %2742 = vmatpush1.bf16.msra.mxu1 %v333_v30  ;;  %v3159_v36 = vpack.c.bf16 %v3151_v34, %v3149_v33  ;;  %v3187_v44 = vmul.f32 %v313_v35, %v277_v20  ;;  %v3199_v48 = vpack.c.bf16 %v324_v46, %v323_v45  ;;  %v340_v53 = vunpack.c.l.bf16 %v333_v30  ;;  %v2812_v20 = vld [vmem:[%s4278_s0 + $0x18] ss:$12 sps:$4 sm:$0xff]   ;;  %v2828_v35 = vld [vmem:[%s4278_s0 + $0x334] ss:$12 sps:$4 sm:$0xff]  }
  0x37   : > { %1258 = vmatprep.subr.bf16.mxu0 %v3024_v7  ;;  %2727 = vmatprep.subr.bf16.mxu1 %v3024_v7  ;;  %v3171_v39 = vpack.c.bf16 %v3163_v38, %v3161_v37  ;;  %v3183_v42 = vpack.c.bf16 %v3175_v41, %v3173_v40  ;;  %v341_v54 = vunpack.c.h.bf16 %v333_v30 }
  0x38   : > { %v3195_v47 = vpack.c.bf16 %v3187_v44, %v3185_v43  ;;  %v342_v49 = vunpack.c.l.bf16 %v3199_v48  ;;  %v343_v50 = vunpack.c.h.bf16 %v3199_v48  ;;  %v354_v56 = vsub.f32 %v321_v25, %v340_v53  ;;  %v2855_v53 = vld [vmem:[%s4278_s0 + $0x390] ss:$12 sps:$4 sm:$0xff]  }
  0x39   : > { %v355_v57 = vsub.f32 %v322_v26, %v341_v54  ;;  %v350_v63 = vunpack.c.l.bf16 %v3159_v36  ;;  %v351_v0 = vunpack.c.h.bf16 %v3159_v36  ;;  %v348_v6 = vunpack.c.l.bf16 %v3171_v39  ;;  %v2856_v54 = vld [vmem:[%s4278_s0 + $0xdc] ss:$12 sps:$4 sm:$0xff]  }
  0x3a   : > { %1259 = vmatpush1.bf16.msra.mxu0 %v3147_v32  ;;  %2743 = vmatpush1.bf16.msra.mxu1 %v3147_v32  ;;  %v356_v51 = vsub.f32 %v323_v45, %v342_v49  ;;  %v357_v52 = vsub.f32 %v324_v46, %v343_v50  ;;  %v349_v8 = vunpack.c.h.bf16 %v3171_v39  ;;  %v346_v13 = vunpack.c.l.bf16 %v3183_v42  ;;  %v2843_v45 = vld [vmem:[%s4278_s0 + $0x360] ss:$12 sps:$4 sm:$0xff]   ;;  %v2849_v49 = vld [vmem:[%s4278_s0 + $0x378] ss:$12 sps:$4 sm:$0xff]  }
  0x3b   : > { %1260 = vmatprep.subr.bf16.mxu0 %v3024_v7  ;;  %2728 = vmatprep.subr.bf16.mxu1 %v3024_v7  ;;  %v368_v58 = vpack.c.bf16 %v355_v57, %v354_v56  ;;  %v364_v4 = vsub.f32 %v3149_v33, %v350_v63  ;;  %v365_v5 = vsub.f32 %v3151_v34, %v351_v0  ;;  %v347_v14 = vunpack.c.h.bf16 %v3183_v42  ;;  %v2825_v33 = vld [vmem:[%s4278_s0 + $0x318] ss:$12 sps:$4 sm:$0xff]   ;;  %v2861_v57 = vld [vmem:[%s4278_s0 + $0x3a8] ss:$12 sps:$4 sm:$0xff]  }
  0x3c   : > { %v369_v55 = vpack.c.bf16 %v357_v52, %v356_v51  ;;  %v362_v11 = vsub.f32 %v3161_v37, %v348_v6  ;;  %v363_v12 = vsub.f32 %v3163_v38, %v349_v8  ;;  %v360_v16 = vsub.f32 %v3173_v40, %v346_v13  ;;  %v2826_v34 = vld [vmem:[%s4278_s0 + $0x64] ss:$12 sps:$4 sm:$0xff]   ;;  %v2832_v38 = vld [vmem:[%s4278_s0 + $0x7c] ss:$12 sps:$4 sm:$0xff]   ;;  %v2844_v46 = vld [vmem:[%s4278_s0 + $0xac] ss:$12 sps:$4 sm:$0xff]  }
  0x3d   : > { %v373_v10 = vpack.c.bf16 %v365_v5, %v364_v4  ;;  %v361_v17 = vsub.f32 %v3175_v41, %v347_v14  ;;  %v344_v18 = vunpack.c.l.bf16 %v3195_v47  ;;  %v345_v19 = vunpack.c.h.bf16 %v3195_v47  ;;  %v2831_v37 = vld [vmem:[%s4278_s0 + $0x330] ss:$12 sps:$4 sm:$0xff]   ;;  %v2836_v40 = vld [vmem:[%s4278_s0 + $0x78] ss:$12 sps:$4 sm:$0xff]   ;;  %v2837_v41 = vld [vmem:[%s4278_s0 + $0x348] ss:$12 sps:$4 sm:$0xff]  }
  0x3e   : > { %1261 = vmatpush1.bf16.msra.mxu0 %v3159_v36  ;;  %2744 = vmatpush1.bf16.msra.mxu1 %v3159_v36  ;;  %v372_v15 = vpack.c.bf16 %v363_v12, %v362_v11  ;;  %v2850_v50 = vld [vmem:[%s4278_s0 + $0xc4] ss:$12 sps:$4 sm:$0xff]   ;;  %v2852_v51 = vld [vmem:[%s4278_s0 + $0x394] ss:$12 sps:$4 sm:$0xff]   ;;  %v2877_v6 = vld [vmem:[%s4278_s0 + $0x13c] ss:$12 sps:$4 sm:$0xff]  }
  0x3f   : > { %1262 = vmatprep.subr.bf16.mxu0 %v3024_v7  ;;  %2729 = vmatprep.subr.bf16.mxu1 %v3024_v7  ;;  %v371_v24 = vpack.c.bf16 %v361_v17, %v360_v16  ;;  %v358_v25 = vsub.f32 %v3185_v43, %v344_v18  ;;  %v359_v26 = vsub.f32 %v3187_v44, %v345_v19  ;;  %v2840_v43 = vld [vmem:[%s4278_s0 + $0x364] ss:$12 sps:$4 sm:$0xff]   ;;  %v2854_v52 = vld [vmem:[%s4278_s0 + $0xc0] ss:$12 sps:$4 sm:$0xff]   ;;  %v2870_v0 = vld [vmem:[%s4278_s0 + $0x108] ss:$12 sps:$4 sm:$0xff]  }
  0x40   : > { %v2842_v44 = vld [vmem:[%s4278_s0 + $0x90] ss:$12 sps:$4 sm:$0xff]   ;;  %v2860_v56 = vld [vmem:[%s4278_s0 + $0xd8] ss:$12 sps:$4 sm:$0xff]   ;;  %v2875_v4 = vld [vmem:[%s4278_s0 + $0x120] ss:$12 sps:$4 sm:$0xff]  }
  0x41   : > { %v370_v27 = vpack.c.bf16 %v359_v26, %v358_v25  ;;  %v2869_v63 = vld [vmem:[%s4278_s0 + $0x38] ss:$12 sps:$4 sm:$0xff]   ;;  %v2876_v5 = vld [vmem:[%s4278_s0 + $0x80] ss:$12 sps:$4 sm:$0xff]   ;;  %v2884_v11 = vld [vmem:[%s4278_s0 + $0xc8] ss:$12 sps:$4 sm:$0xff]  }
  0x42   : > { %1263 = vmatpush1.bf16.msra.mxu0 %v3171_v39  ;;  %2745 = vmatpush1.bf16.msra.mxu1 %v3171_v39  ;;  %v2879_v8 = vld [vmem:[%s4278_s0 + $0x98] ss:$12 sps:$4 sm:$0xff]   ;;  %v2885_v12 = vld [vmem:[%s4278_s0 + $0x150] ss:$12 sps:$4 sm:$0xff]   ;;  %v2886_v13 = vld [vmem:[%s4278_s0 + $0xe0] ss:$12 sps:$4 sm:$0xff]  }
  0x43   : > { %1264 = vmatprep.subr.bf16.mxu0 %v3024_v7  ;;  %2730 = vmatprep.subr.bf16.mxu1 %v3024_v7  ;;  %v2887_v14 = vld [vmem:[%s4278_s0 + $0x16c] ss:$12 sps:$4 sm:$0xff]   ;;  %v2890_v16 = vld [vmem:[%s4278_s0 + $0x168] ss:$12 sps:$4 sm:$0xff]   ;;  %v2891_v17 = vld [vmem:[%s4278_s0 + $0x110] ss:$12 sps:$4 sm:$0xff]  }
  0x44   : > { %v2892_v18 = vld [vmem:[%s4278_s0 + $0x184] ss:$12 sps:$4 sm:$0xff]   ;;  %v2894_v19 = vld [vmem:[%s4278_s0 + $0x128] ss:$12 sps:$4 sm:$0xff]  }
  0x45   : > { %v2901_v25 = vld [vmem:[%s4278_s0 + $0x170] ss:$12 sps:$4 sm:$0xff]   ;;  %v2902_v26 = vld [vmem:[%s4278_s0 + $0x1b4] ss:$12 sps:$4 sm:$0xff]  }
  0x46   : > { %1265 = vmatpush1.bf16.msra.mxu0 %v3183_v42  ;;  %2746 = vmatpush1.bf16.msra.mxu1 %v3183_v42 }
  0x47   : > { %1266 = vmatprep.subr.bf16.mxu0 %v3024_v7  ;;  %2731 = vmatprep.subr.bf16.mxu1 %v3024_v7 }
  0x4a   : > { %1267 = vmatpush1.bf16.msra.mxu0 %v3195_v47  ;;  %2747 = vmatpush1.bf16.msra.mxu1 %v3195_v47 }
  0x4b   : > { %1268 = vmatprep.subr.bf16.mxu0 %v3024_v7  ;;  %2732 = vmatprep.subr.bf16.mxu1 %v3024_v7 }
  0x4e   : > { %1269 = vmatpush1.bf16.msra.mxu0 %v3199_v48  ;;  %2748 = vmatpush1.bf16.msra.mxu1 %v3199_v48 }
  0x4f   : > { %1270 = vmatprep.subr.bf16.mxu0 %v3024_v7  ;;  %2733 = vmatprep.subr.bf16.mxu1 %v3024_v7 }
  0x52   : > { %1271 = vmatpush1.bf16.msra.mxu0 %v333_v30  ;;  %2749 = vmatpush1.bf16.msra.mxu1 %v333_v30  ;;  %v2820_v30 = vld [vmem:[%s4278_s0 + $0x4c] ss:$12 sps:$4 sm:$0xff]  }
  0x53   : > { %1272 = vmatprep.subr.bf16.mxu0 %v3024_v7  ;;  %2734 = vmatprep.subr.bf16.mxu1 %v3024_v7 }
  0x56   : > { %1273 = vmatpush2.bf16.msra.mxu0 %v369_v55  ;;  %2750 = vmatpush2.bf16.msra.mxu1 %v369_v55  ;;  %v2858_v55 = vld [vmem:[%s4278_s0 + $0x3ac] ss:$12 sps:$4 sm:$0xff]  }
  0x57   : > { %1274 = vmatprep.subr.bf16.mxu0 %v3024_v7  ;;  %2735 = vmatprep.subr.bf16.mxu1 %v3024_v7 }
  0x5a   : > { %1275 = vmatpush2.bf16.msra.mxu0 %v368_v58  ;;  %2751 = vmatpush2.bf16.msra.mxu1 %v368_v58  ;;  %v2862_v58 = vld [vmem:[%s4278_s0 + $0xf4] ss:$12 sps:$4 sm:$0xff]  }
  0x5b   : > { %1276 = vmatprep.subr.bf16.mxu0 %v3024_v7  ;;  %2736 = vmatprep.subr.bf16.mxu1 %v3024_v7 }
  0x5e   : > { %1277 = vmatpush2.bf16.msra.mxu0 %v3147_v32  ;;  %2752 = vmatpush2.bf16.msra.mxu1 %v3147_v32  ;;  %v2824_v32 = vld [vmem:[%s4278_s0 + $0x48] ss:$12 sps:$4 sm:$0xff]  }
  0x5f   : > { %1278 = vmatprep.subr.bf16.mxu0 %v3024_v7  ;;  %2737 = vmatprep.subr.bf16.mxu1 %v3024_v7 }
  0x62   : > { %1279 = vmatpush2.bf16.msra.mxu0 %v3159_v36  ;;  %2753 = vmatpush2.bf16.msra.mxu1 %v3159_v36  ;;  %v2830_v36 = vld [vmem:[%s4278_s0 + $0x60] ss:$12 sps:$4 sm:$0xff]  }
  0x63   : > { %1280 = vmatprep.subr.bf16.mxu0 %v3024_v7  ;;  %2738 = vmatprep.subr.bf16.mxu1 %v3024_v7 }
  0x66   : > { %1281 = vmatpush2.bf16.msra.mxu0 %v3171_v39  ;;  %2754 = vmatpush2.bf16.msra.mxu1 %v3171_v39  ;;  %v2834_v39 = vld [vmem:[%s4278_s0 + $0x34c] ss:$12 sps:$4 sm:$0xff]  }
  0x67   : > { %1282 = vmatprep.subr.bf16.mxu0 %v3024_v7  ;;  %2739 = vmatprep.subr.bf16.mxu1 %v3024_v7 }
  0x6a   : > { %1283 = vmatpush2.bf16.msra.mxu0 %v3183_v42  ;;  %2755 = vmatpush2.bf16.msra.mxu1 %v3183_v42  ;;  %v2838_v42 = vld [vmem:[%s4278_s0 + $0x94] ss:$12 sps:$4 sm:$0xff]  }
  0x6b   : > { %1284 = vmatprep.subr.bf16.mxu0 %v3024_v7  ;;  %2740 = vmatprep.subr.bf16.mxu1 %v3024_v7 }
  0x6e   : > { %1285 = vmatpush2.bf16.msra.mxu0 %v3195_v47  ;;  %2756 = vmatpush2.bf16.msra.mxu1 %v3195_v47  ;;  %v2846_v47 = vld [vmem:[%s4278_s0 + $0x37c] ss:$12 sps:$4 sm:$0xff]  }
  0x6f   : > { %1286 = vmatprep.subr.bf16.mxu0 %v3024_v7  ;;  %2741 = vmatprep.subr.bf16.mxu1 %v3024_v7  ;;  %v2808_v7 = vld [vmem:[%s4278_s0 + $0x1c] ss:$12 sps:$4 sm:$0xff]  }
  0x72   : > { %1287 = vmatpush2.bf16.msra.mxu0 %v3199_v48  ;;  %2757 = vmatpush2.bf16.msra.mxu1 %v3199_v48  ;;  %v2848_v48 = vld [vmem:[%s4278_s0 + $0xa8] ss:$12 sps:$4 sm:$0xff]  }
  0x73   : > { %2636 = vmatprep.subr.bf16.mxu1 %v374_v1 }
  0x75   : > { %1289 = vmatmul.mubr.bf16.vlgmr.msra.gmra.mxu0 %v2802_v2  ;;  %1529 = vmatmul.mubr.bf16.vlgmr.msra.gmra.mxu1 %v2805_v3  ;;  %v2872_v2 = vld [vmem:[%s4278_s0 + $0x124] ss:$12 sps:$4 sm:$0xff]   ;;  %v2874_v3 = vld [vmem:[%s4278_s0 + $0x68] ss:$12 sps:$4 sm:$0xff]  }
  0x76   : > { %2637 = vmatpush3.bf16.msra.mxu1 %v374_v1  ;;  %1296 = vmatprep.mubr.bf16.mxu0 %v2808_v7  ;;  %v2871_v1 = vld [vmem:[%s4278_s0 + $0x50] ss:$12 sps:$4 sm:$0xff]   ;;  %v2880_v7 = vld [vmem:[%s4278_s0 + $0x138] ss:$12 sps:$4 sm:$0xff]  }
  0x77   : > { %1536 = vmatprep.mubr.bf16.mxu1 %v2810_v9  ;;  %2638 = vmatprep.subr.bf16.mxu1 %v373_v10  ;;  %v2881_v9 = vld [vmem:[%s4278_s0 + $0xb0] ss:$12 sps:$4 sm:$0xff]  }
  0x7a   : > { %2639 = vmatpush3.bf16.msra.mxu1 %v373_v10  ;;  %v2882_v10 = vld [vmem:[%s4278_s0 + $0x154] ss:$12 sps:$4 sm:$0xff]  }
  0x7b   : > { %2640 = vmatprep.subr.bf16.mxu1 %v372_v15 }
  0x7d   : > { %1297 = vmatmul.mubr.bf16.gmra.mxu0 %v2812_v20  ;;  %1537 = vmatmul.mubr.bf16.gmra.mxu1 %v2813_v21  ;;  %v2895_v20 = vld [vmem:[%s4278_s0 + $0x180] ss:$12 sps:$4 sm:$0xff]  }
  0x7e   : > { %1304 = vmatprep.mubr.bf16.mxu0 %v2814_v22  ;;  %1544 = vmatprep.mubr.bf16.mxu1 %v2816_v23  ;;  %v2896_v21 = vld [vmem:[%s4278_s0 + $0x140] ss:$12 sps:$4 sm:$0xff]   ;;  %v2897_v22 = vld [vmem:[%s4278_s0 + $0x19c] ss:$12 sps:$4 sm:$0xff]   ;;  %v2899_v23 = vld [vmem:[%s4278_s0 + $0x158] ss:$12 sps:$4 sm:$0xff]  }
  0x7f   : > { %2641 = vmatpush3.bf16.msra.mxu1 %v372_v15  ;;  %v2889_v15 = vld [vmem:[%s4278_s0 + $0xf8] ss:$12 sps:$4 sm:$0xff]  }
  0x80   : > { %2642 = vmatprep.subr.bf16.mxu1 %v371_v24 }
  0x83   : > { %2643 = vmatpush3.bf16.msra.mxu1 %v371_v24  ;;  %v2900_v24 = vld [vmem:[%s4278_s0 + $0x198] ss:$12 sps:$4 sm:$0xff]  }
  0x84   : > { %2644 = vmatprep.subr.bf16.mxu1 %v370_v27 }
  0x85   : > { %1305 = vmatmul.mubr.bf16.gmra.mxu0 %v2818_v28  ;;  %1545 = vmatmul.mubr.bf16.gmra.mxu1 %v2819_v29  ;;  %v2905_v28 = vld [vmem:[%s4278_s0 + $0x1b0] ss:$12 sps:$4 sm:$0xff]   ;;  %v2906_v29 = vld [vmem:[%s4278_s0 + $0x1a0] ss:$12 sps:$4 sm:$0xff]  }
  0x86   : > { %1312 = vmatprep.mubr.bf16.mxu0 %v2820_v30  ;;  %1552 = vmatprep.mubr.bf16.mxu1 %v2822_v31  ;;  %v2907_v30 = vld [vmem:[%s4278_s0 + $0x1cc] ss:$12 sps:$4 sm:$0xff]  }
  0x87   : > { %2645 = vmatpush3.bf16.msra.mxu1 %v370_v27  ;;  %v2904_v27 = vld [vmem:[%s4278_s0 + $0x188] ss:$12 sps:$4 sm:$0xff]   ;;  %v2909_v31 = vld [vmem:[%s4278_s0 + $0x1b8] ss:$12 sps:$4 sm:$0xff]  }
  0x8d   : > { %1313 = vmatmul.mubr.bf16.gmra.mxu0 %v2824_v32  ;;  %1553 = vmatmul.mubr.bf16.gmra.mxu1 %v2825_v33  ;;  %v2910_v32 = vld [vmem:[%s4278_s0 + $0x1c8] ss:$12 sps:$4 sm:$0xff]   ;;  %v2911_v33 = vld [vmem:[%s4278_s0 + $0x1d0] ss:$12 sps:$4 sm:$0xff]  }
  0x8e   : > { %1320 = vmatprep.mubr.bf16.mxu0 %v2826_v34  ;;  %1560 = vmatprep.mubr.bf16.mxu1 %v2828_v35  ;;  %v2912_v34 = vld [vmem:[%s4278_s0 + $0x1e4] ss:$12 sps:$4 sm:$0xff]   ;;  %v2914_v35 = vld [vmem:[%s4278_s0 + $0x1e8] ss:$12 sps:$4 sm:$0xff]  }
  0x95   : > { %1321 = vmatmul.mubr.bf16.gmra.mxu0 %v2830_v36  ;;  %1561 = vmatmul.mubr.bf16.gmra.mxu1 %v2831_v37  ;;  %v2915_v36 = vld [vmem:[%s4278_s0 + $0x1e0] ss:$12 sps:$4 sm:$0xff]  }
  0x96   : > { %1328 = vmatprep.mubr.bf16.mxu0 %v2832_v38  ;;  %1568 = vmatprep.mubr.bf16.mxu1 %v2834_v39  ;;  %v2916_v37 = vld [vmem:[%s4278_s0 + $0x200] ss:$12 sps:$4 sm:$0xff]   ;;  %v2917_v38 = vld [vmem:[%s4278_s0 + $0x1fc] ss:$12 sps:$4 sm:$0xff]   ;;  %v2919_v39 = vld [vmem:[%s4278_s0 + $0x218] ss:$12 sps:$4 sm:$0xff]  }
  0x9d   : > { %1329 = vmatmul.mubr.bf16.gmra.mxu0 %v2836_v40  ;;  %1569 = vmatmul.mubr.bf16.gmra.mxu1 %v2837_v41  ;;  %v2920_v40 = vld [vmem:[%s4278_s0 + $0x1f8] ss:$12 sps:$4 sm:$0xff]   ;;  %v2921_v41 = vld [vmem:[%s4278_s0 + $0x230] ss:$12 sps:$4 sm:$0xff]  }
  0x9e   : > { %1336 = vmatprep.mubr.bf16.mxu0 %v2838_v42  ;;  %1576 = vmatprep.mubr.bf16.mxu1 %v2840_v43  ;;  %v2922_v42 = vld [vmem:[%s4278_s0 + $0x214] ss:$12 sps:$4 sm:$0xff]  }
  0x9f   : > { %v2924_v43 = vld [vmem:[%s4278_s0 + $0x248] ss:$12 sps:$4 sm:$0xff]  }
  0xa5   : > { %1337 = vmatmul.mubr.bf16.gmra.mxu0 %v2842_v44  ;;  %1577 = vmatmul.mubr.bf16.gmra.mxu1 %v2843_v45  ;;  %v2925_v44 = vld [vmem:[%s4278_s0 + $0x210] ss:$12 sps:$4 sm:$0xff]   ;;  %v2926_v45 = vld [vmem:[%s4278_s0 + $0x260] ss:$12 sps:$4 sm:$0xff]  }
  0xa6   : > { %1344 = vmatprep.mubr.bf16.mxu0 %v2844_v46  ;;  %1584 = vmatprep.mubr.bf16.mxu1 %v2846_v47  ;;  %v2927_v46 = vld [vmem:[%s4278_s0 + $0x22c] ss:$12 sps:$4 sm:$0xff]  }
  0xa7   : > { %v2929_v47 = vld [vmem:[%s4278_s0 + $0x278] ss:$12 sps:$4 sm:$0xff]  }
  0xad   : > { %1345 = vmatmul.mubr.bf16.gmra.mxu0 %v2848_v48  ;;  %1585 = vmatmul.mubr.bf16.gmra.mxu1 %v2849_v49  ;;  %v2930_v48 = vld [vmem:[%s4278_s0 + $0x228] ss:$12 sps:$4 sm:$0xff]   ;;  %v2931_v49 = vld [vmem:[%s4278_s0 + $0x290] ss:$12 sps:$4 sm:$0xff]  }
  0xae   : > { %1352 = vmatprep.mubr.bf16.mxu0 %v2850_v50  ;;  %1592 = vmatprep.mubr.bf16.mxu1 %v2852_v51  ;;  %v2932_v50 = vld [vmem:[%s4278_s0 + $0x244] ss:$12 sps:$4 sm:$0xff]   ;;  %v2934_v51 = vld [vmem:[%s4278_s0 + $0x2a8] ss:$12 sps:$4 sm:$0xff]  }
  0xb5   : > { %1353 = vmatmul.mubr.bf16.gmra.mxu0 %v2854_v52  ;;  %1593 = vmatmul.mubr.bf16.gmra.mxu1 %v2855_v53  ;;  %v2935_v52 = vld [vmem:[%s4278_s0 + $0x240] ss:$12 sps:$4 sm:$0xff]  }
  0xb6   : > { %1360 = vmatprep.mubr.bf16.mxu0 %v2856_v54  ;;  %1600 = vmatprep.mubr.bf16.mxu1 %v2858_v55  ;;  %v2936_v53 = vld [vmem:[%s4278_s0 + $0x2c0] ss:$12 sps:$4 sm:$0xff]   ;;  %v2937_v54 = vld [vmem:[%s4278_s0 + $0x25c] ss:$12 sps:$4 sm:$0xff]   ;;  %v2939_v55 = vld [vmem:[%s4278_s0 + $0x2d8] ss:$12 sps:$4 sm:$0xff]  }
  0xbd   : > { %1361 = vmatmul.mubr.bf16.gmra.mxu0 %v2860_v56  ;;  %1601 = vmatmul.mubr.bf16.gmra.mxu1 %v2861_v57 }
  0xbe   : > { %1368 = vmatprep.mubr.bf16.mxu0 %v2862_v58  ;;  %2646 = vmatprep.mubr.msk.bf16.mxu1 %vm1135_vm0, %v2864_v59 }
  0xc5   : > { %1369 = vmatmul.mubr.bf16.gmra.mxu0 %v2865_v60  ;;  %2647 = vmatmul.mubr.msk.bf16.vlgmr.msra.gmra.mxu1 %vm1135_vm0, %v2866_v61 }
  0xc6   : > { %1376 = vmatprep.mubr.bf16.mxu0 %v2867_v62  ;;  %2650 = vmatprep.mubr.msk.bf16.mxu1 %vm1135_vm0, %v2869_v63  ;;  %v2940_v62 = vld [vmem:[%s4278_s0 + $0x258] ss:$12 sps:$4 sm:$0xff]   ;;  %v2941_v63 = vld [vmem:[%s4278_s0 + $0x2f0] ss:$12 sps:$4 sm:$0xff]  }
  0xcd   : > { %1377 = vmatmul.mubr.bf16.gmra.mxu0 %v2870_v0  ;;  %2651 = vmatmul.mubr.msk.bf16.gmra.mxu1 %vm1135_vm0, %v2871_v1  ;;  %v2942_v0 = vld [vmem:[%s4278_s0 + $0x274] ss:$12 sps:$4 sm:$0xff]  }
  0xce   : > { %1384 = vmatprep.mubr.bf16.mxu0 %v2872_v2  ;;  %2654 = vmatprep.mubr.msk.bf16.mxu1 %vm1135_vm0, %v2874_v3  ;;  %v2944_v1 = vld [vmem:[%s4278_s0 + $0x308] ss:$12 sps:$4 sm:$0xff]  }
  0xd5   : > { %1385 = vmatmul.mubr.bf16.gmra.mxu0 %v2875_v4  ;;  %2655 = vmatmul.mubr.msk.bf16.gmra.mxu1 %vm1135_vm0, %v2876_v5 }
  0xd6   : > { %1392 = vmatprep.mubr.bf16.mxu0 %v2877_v6  ;;  %2658 = vmatprep.mubr.msk.bf16.mxu1 %vm1135_vm0, %v2879_v8 }
  0xdd   : > { %1393 = vmatmul.mubr.bf16.gmra.mxu0 %v2880_v7  ;;  %2659 = vmatmul.mubr.msk.bf16.gmra.mxu1 %vm1135_vm0, %v2881_v9 }
  0xde   : > { %1400 = vmatprep.mubr.bf16.mxu0 %v2882_v10  ;;  %2662 = vmatprep.mubr.msk.bf16.mxu1 %vm1135_vm0, %v2884_v11  ;;  %v2945_v10 = vld [vmem:[%s4278_s0 + $0x270] ss:$12 sps:$4 sm:$0xff]   ;;  %v2946_v11 = vld [vmem:[%s4278_s0 + $0x320] ss:$12 sps:$4 sm:$0xff]  }
  0xe5   : > { %1401 = vmatmul.mubr.bf16.gmra.mxu0 %v2885_v12  ;;  %2663 = vmatmul.mubr.msk.bf16.gmra.mxu1 %vm1135_vm0, %v2886_v13  ;;  %v2947_v12 = vld [vmem:[%s4278_s0 + $0x28c] ss:$12 sps:$4 sm:$0xff]  }
  0xe6   : > { %1408 = vmatprep.mubr.bf16.mxu0 %v2887_v14  ;;  %2666 = vmatprep.mubr.msk.bf16.mxu1 %vm1135_vm0, %v2889_v15  ;;  %v2949_v13 = vld [vmem:[%s4278_s0 + $0x338] ss:$12 sps:$4 sm:$0xff]  }
  0xed   : > { %1409 = vmatmul.mubr.bf16.gmra.mxu0 %v2890_v16  ;;  %2667 = vmatmul.mubr.msk.bf16.gmra.mxu1 %vm1135_vm0, %v2891_v17 }
  0xee   : > { %1416 = vmatprep.mubr.bf16.mxu0 %v2892_v18  ;;  %2670 = vmatprep.mubr.msk.bf16.mxu1 %vm1135_vm0, %v2894_v19 }
  0xf5   : > { %1417 = vmatmul.mubr.bf16.gmra.mxu0 %v2895_v20  ;;  %2671 = vmatmul.mubr.msk.bf16.gmra.mxu1 %vm1135_vm0, %v2896_v21 }
  0xf6   : > { %1424 = vmatprep.mubr.bf16.mxu0 %v2897_v22  ;;  %2674 = vmatprep.mubr.msk.bf16.mxu1 %vm1135_vm0, %v2899_v23  ;;  %v2950_v22 = vld [vmem:[%s4278_s0 + $0x288] ss:$12 sps:$4 sm:$0xff]   ;;  %v2951_v23 = vld [vmem:[%s4278_s0 + $0x350] ss:$12 sps:$4 sm:$0xff]  }
  0xfd   : > { %1425 = vmatmul.mubr.bf16.gmra.mxu0 %v2900_v24  ;;  %2675 = vmatmul.mubr.msk.bf16.gmra.mxu1 %vm1135_vm0, %v2901_v25  ;;  %v2954_v24 = vld [vmem:[%s4278_s0 + $0x2a4] ss:$12 sps:$4 sm:$0xff]   ;;  %v2955_v25 = vld [vmem:[%s4278_s0 + $0x368] ss:$12 sps:$4 sm:$0xff]  }
  0xfe   : > { %1432 = vmatprep.mubr.bf16.mxu0 %v2902_v26  ;;  %2678 = vmatprep.mubr.msk.bf16.mxu1 %vm1135_vm0, %v2904_v27 }
 0x105   : > { %1433 = vmatmul.mubr.bf16.gmra.mxu0 %v2905_v28  ;;  %2679 = vmatmul.mubr.msk.bf16.gmra.mxu1 %vm1135_vm0, %v2906_v29 }
 0x106   : > { %1440 = vmatprep.mubr.bf16.mxu0 %v2907_v30  ;;  %2682 = vmatprep.mubr.msk.bf16.mxu1 %vm1135_vm0, %v2909_v31 }
 0x10d   : > { %1441 = vmatmul.mubr.bf16.gmra.mxu0 %v2910_v32  ;;  %2683 = vmatmul.mubr.msk.bf16.gmra.mxu1 %vm1135_vm0, %v2911_v33 }
 0x10e   : > { %1448 = vmatprep.mubr.bf16.mxu0 %v2912_v34  ;;  %2686 = vmatprep.mubr.msk.bf16.mxu1 %vm1135_vm0, %v2914_v35  ;;  %v2952_v34 = vld [vmem:[%s4278_s0 + $0x2a0] ss:$12 sps:$4 sm:$0xff]  }
 0x10f   : > { %v2956_v35 = vld [vmem:[%s4278_s0 + $0x380] ss:$12 sps:$4 sm:$0xff]  }
 0x115   : > { %1449 = vmatmul.mubr.bf16.gmra.mxu0 %v2915_v36  ;;  %2687 = vmatmul.mubr.msk.bf16.gmra.mxu1 %vm1135_vm0, %v2916_v37  ;;  %v2959_v36 = vld [vmem:[%s4278_s0 + $0x2bc] ss:$12 sps:$4 sm:$0xff]   ;;  %v2960_v37 = vld [vmem:[%s4278_s0 + $0x398] ss:$12 sps:$4 sm:$0xff]  }
 0x116   : > { %1456 = vmatprep.mubr.bf16.mxu0 %v2917_v38  ;;  %2690 = vmatprep.mubr.msk.bf16.mxu1 %vm1135_vm0, %v2919_v39 }
 0x11d   : > { %1457 = vmatmul.mubr.bf16.gmra.mxu0 %v2920_v40  ;;  %2691 = vmatmul.mubr.msk.bf16.gmra.mxu1 %vm1135_vm0, %v2921_v41 }
 0x11e   : > { %1464 = vmatprep.mubr.bf16.mxu0 %v2922_v42  ;;  %2694 = vmatprep.mubr.msk.bf16.mxu1 %vm1135_vm0, %v2924_v43 }
 0x125   : > { %1465 = vmatmul.mubr.bf16.gmra.mxu0 %v2925_v44  ;;  %2695 = vmatmul.mubr.msk.bf16.gmra.mxu1 %vm1135_vm0, %v2926_v45 }
 0x126   : > { %1472 = vmatprep.mubr.bf16.mxu0 %v2927_v46  ;;  %2698 = vmatprep.mubr.msk.bf16.mxu1 %vm1135_vm0, %v2929_v47  ;;  %v2957_v46 = vld [vmem:[%s4278_s0 + $0x2b8] ss:$12 sps:$4 sm:$0xff]   ;;  %v2961_v47 = vld [vmem:[%s4278_s0 + $0x3b0] ss:$12 sps:$4 sm:$0xff]  }
 0x12d   : > { %1473 = vmatmul.mubr.bf16.gmra.mxu0 %v2930_v48  ;;  %2699 = vmatmul.mubr.msk.bf16.gmra.mxu1 %vm1135_vm0, %v2931_v49 }
 0x12e   : > { %1480 = vmatprep.mubr.bf16.mxu0 %v2932_v50  ;;  %2702 = vmatprep.mubr.msk.bf16.mxu1 %vm1135_vm0, %v2934_v51 }
 0x135   : > { %v3588_v56 = vpop.f32.mrf.mxu0  ;;  %1481 = vmatmul.mubr.bf16.gmra.mxu0 %v2935_v52  ;;  %v3590_v57 = vpop.f32.mrf.mxu1  ;;  %2703 = vmatmul.mubr.msk.bf16.gmra.mxu1 %vm1135_vm0, %v2936_v53 }
 0x136   : > { %4285 = vst [vmem:[#allocation8_spill] sm:$0xff] %v3590_v57  ;;  %1488 = vmatprep.mubr.bf16.mxu0 %v2937_v54  ;;  %2706 = vmatprep.mubr.msk.bf16.mxu1 %vm1135_vm0, %v2939_v55 }
 0x137   : > { %v1292_v58 = vpop.f32.mrf.mxu0  ;;  %v1532_v59 = vpop.f32.mrf.mxu1 }
 0x139   : > { %v3594_v60 = vpop.f32.mrf.mxu0  ;;  %v3596_v61 = vpop.f32.mrf.mxu1 }
 0x13a   : > { %4286 = vst [vmem:[#allocation9_spill] sm:$0xff] %v3596_v61 }
 0x13b   : > { %v1295_v2 = vpop.f32.mrf.mxu0  ;;  %v1535_v3 = vpop.f32.mrf.mxu1 }
 0x13d   : > { %v3610_v4 = vpop.f32.mrf.mxu0  ;;  %1489 = vmatmul.mubr.bf16.gmra.mxu0 %v2940_v62  ;;  %v3612_v5 = vpop.f32.mrf.mxu1  ;;  %2707 = vmatmul.mubr.msk.bf16.gmra.mxu1 %vm1135_vm0, %v2941_v63 }
 0x13e   : > { %4287 = vst [vmem:[#allocation10_spill] sm:$0xff] %v3612_v5  ;;  %1496 = vmatprep.mubr.bf16.mxu0 %v2942_v0  ;;  %2710 = vmatprep.mubr.msk.bf16.mxu1 %vm1135_vm0, %v2944_v1 }
 0x13f   : > { %v1300_v6 = vpop.f32.mrf.mxu0  ;;  %v1540_v8 = vpop.f32.mrf.mxu1 }
 0x141   : > { %v3616_v7 = vpop.f32.mrf.mxu0  ;;  %v3618_v9 = vpop.f32.mrf.mxu1 }
 0x142   : > { %4288 = vst [vmem:[#allocation11_spill] sm:$0xff] %v3618_v9 }
 0x143   : > { %v1303_v14 = vpop.f32.mrf.mxu0  ;;  %v1543_v15 = vpop.f32.mrf.mxu1 }
 0x145   : > { %v3632_v16 = vpop.f32.mrf.mxu0  ;;  %1497 = vmatmul.mubr.bf16.gmra.mxu0 %v2945_v10  ;;  %v3634_v17 = vpop.f32.mrf.mxu1  ;;  %2711 = vmatmul.mubr.msk.bf16.gmra.mxu1 %vm1135_vm0, %v2946_v11 }
 0x146   : > { %4289 = vst [vmem:[#allocation12_spill] sm:$0xff] %v3634_v17  ;;  %1504 = vmatprep.mubr.bf16.mxu0 %v2947_v12  ;;  %2714 = vmatprep.mubr.msk.bf16.mxu1 %vm1135_vm0, %v2949_v13 }
 0x147   : > { %v1308_v18 = vpop.f32.mrf.mxu0  ;;  %v1548_v19 = vpop.f32.mrf.mxu1 }
 0x149   : > { %v3638_v20 = vpop.f32.mrf.mxu0  ;;  %v3640_v21 = vpop.f32.mrf.mxu1 }
 0x14a   : > { %4290 = vst [vmem:[#allocation13_spill] sm:$0xff] %v3640_v21 }
 0x14b   : > { %v1311_v26 = vpop.f32.mrf.mxu0  ;;  %v1551_v27 = vpop.f32.mrf.mxu1 }
 0x14d   : > { %v3654_v28 = vpop.f32.mrf.mxu0  ;;  %1505 = vmatmul.mubr.bf16.gmra.mxu0 %v2950_v22  ;;  %v3656_v29 = vpop.f32.mrf.mxu1  ;;  %2715 = vmatmul.mubr.msk.bf16.gmra.mxu1 %vm1135_vm0, %v2951_v23 }
 0x14e   : > { %1512 = vmatprep.mubr.bf16.mxu0 %v2954_v24  ;;  %2718 = vmatprep.mubr.msk.bf16.mxu1 %vm1135_vm0, %v2955_v25 }
 0x14f   : > { %v1316_v30 = vpop.f32.mrf.mxu0  ;;  %v1556_v31 = vpop.f32.mrf.mxu1 }
 0x151   : > { %v3660_v32 = vpop.f32.mrf.mxu0  ;;  %v3662_v33 = vpop.f32.mrf.mxu1 }
 0x152   : > { %4291 = vst [vmem:[#allocation14_spill] sm:$0xff] %v3662_v33 }
 0x153   : > { %v1319_v38 = vpop.f32.mrf.mxu0  ;;  %v1559_v39 = vpop.f32.mrf.mxu1 }
 0x155   : > { %v3676_v40 = vpop.f32.mrf.mxu0  ;;  %1513 = vmatmul.mubr.bf16.gmra.mxu0 %v2952_v34  ;;  %v3678_v41 = vpop.f32.mrf.mxu1  ;;  %2719 = vmatmul.mubr.msk.bf16.gmra.mxu1 %vm1135_vm0, %v2956_v35 }
 0x156   : > { %4292 = vst [vmem:[#allocation15_spill] sm:$0xff] %v3678_v41  ;;  %1520 = vmatprep.mubr.bf16.mxu0 %v2959_v36  ;;  %2722 = vmatprep.mubr.msk.bf16.mxu1 %vm1135_vm0, %v2960_v37 }
 0x157   : > { %v1324_v42 = vpop.f32.mrf.mxu0  ;;  %v1564_v43 = vpop.f32.mrf.mxu1 }
 0x159   : > { %v3682_v44 = vpop.f32.mrf.mxu0  ;;  %v3684_v45 = vpop.f32.mrf.mxu1 }
 0x15a   : > { %4293 = vst [vmem:[#allocation16_spill] sm:$0xff] %v3684_v45 }
 0x15b   : > { %v1327_v48 = vpop.f32.mrf.mxu0  ;;  %v1567_v49 = vpop.f32.mrf.mxu1 }
 0x15d   : > { %v1330_v50 = vpop.f32.mrf.mxu0  ;;  %1521 = vmatmul.mubr.bf16.gmra.mxu0 %v2957_v46  ;;  %v3692_v51 = vpop.f32.mrf.mxu1  ;;  %2723 = vmatmul.mubr.msk.bf16.gmra.mxu1 %vm1135_vm0, %v2961_v47 }
 0x15e   : > { %4294 = vst [vmem:[#allocation17_spill] sm:$0xff] %v3692_v51 }
 0x15f   : > { %v1332_v52 = vpop.f32.mrf.mxu0  ;;  %v1572_v53 = vpop.f32.mrf.mxu1 }
 0x161   : > { %v1333_v54 = vpop.f32.mrf.mxu0  ;;  %v3695_v55 = vpop.f32.mrf.mxu1 }
 0x162   : > { %4295 = vst [vmem:[#allocation18_spill] sm:$0xff] %v3695_v55 }
 0x163   : > { %v1335_v58 = vpop.f32.mrf.mxu0  ;;  %v1575_v59 = vpop.f32.mrf.mxu1 }
 0x165   : > { %v3697_v62 = vpop.f32.mrf.mxu0  ;;  %v3699_v63 = vpop.f32.mrf.mxu1 }
 0x166   : > { %4296 = vst [vmem:[#allocation19_spill] sm:$0xff] %v3699_v63 }
 0x167   : > { %v1340_v0 = vpop.f32.mrf.mxu0  ;;  %v1580_v1 = vpop.f32.mrf.mxu1 }
 0x169   : > { %v3701_v2 = vpop.f32.mrf.mxu0  ;;  %v3703_v3 = vpop.f32.mrf.mxu1 }
 0x16a   : > { %4297 = vst [vmem:[#allocation20_spill] sm:$0xff] %v3703_v3 }
 0x16b   : > { %v1343_v6 = vpop.f32.mrf.mxu0  ;;  %v1583_v8 = vpop.f32.mrf.mxu1 }
 0x16d   : > { %v1346_v10 = vpop.f32.mrf.mxu0  ;;  %v3705_v11 = vpop.f32.mrf.mxu1 }
 0x16e   : > { %4298 = vst [vmem:[#allocation21_spill] sm:$0xff] %v3705_v11 }
 0x16f   : > { %v1348_v12 = vpop.f32.mrf.mxu0  ;;  %v1588_v13 = vpop.f32.mrf.mxu1 }
 0x171   : > { %v1349_v14 = vpop.f32.mrf.mxu0  ;;  %v3707_v15 = vpop.f32.mrf.mxu1 }
 0x172   : > { %4299 = vst [vmem:[#allocation22_spill] sm:$0xff] %v3707_v15 }
 0x173   : > { %v1351_v18 = vpop.f32.mrf.mxu0  ;;  %v1591_v19 = vpop.f32.mrf.mxu1 }
 0x175   : > { %v1354_v22 = vpop.f32.mrf.mxu0  ;;  %v3709_v23 = vpop.f32.mrf.mxu1 }
 0x176   : > { %4300 = vst [vmem:[#allocation23_spill] sm:$0xff] %v3709_v23 }
 0x177   : > { %v1356_v24 = vpop.f32.mrf.mxu0  ;;  %v1596_v25 = vpop.f32.mrf.mxu1 }
 0x179   : > { %v3711_v26 = vpop.f32.mrf.mxu0  ;;  %v3713_v27 = vpop.f32.mrf.mxu1 }
 0x17a   : > { %4301 = vst [vmem:[#allocation24_spill] sm:$0xff] %v3713_v27 }
 0x17b   : > { %v1359_v30 = vpop.f32.mrf.mxu0  ;;  %v1599_v31 = vpop.f32.mrf.mxu1 }
 0x17d   : > { %v1362_v34 = vpop.f32.mrf.mxu0  ;;  %v3715_v35 = vpop.f32.mrf.mxu1 }
 0x17e   : > { %4302 = vst [vmem:[#allocation25_spill] sm:$0xff] %v3715_v35 }
 0x17f   : > { %v1364_v36 = vpop.f32.mrf.mxu0  ;;  %v1604_v37 = vpop.f32.mrf.mxu1 }
 0x181   : > { %v1365_v38 = vpop.f32.mrf.mxu0  ;;  %v3717_v39 = vpop.f32.mrf.mxu1 }
 0x182   : > { %4303 = vst [vmem:[#allocation26_spill] sm:$0xff] %v3717_v39 }
 0x183   : > { %v1367_v42 = vpop.f32.mrf.mxu0  ;;  %v1607_v43 = vpop.f32.mrf.mxu1 }
 0x185   : > { %v1370_v46 = vpop.f32.mrf.mxu0  ;;  %v3719_v47 = vpop.f32.mrf.mxu1 }
 0x187   : > { %v1372_v48 = vpop.f32.mrf.mxu0  ;;  %v3721_v49 = vpop.f32.mrf.mxu1 }
 0x189   : > { %v1373_v52 = vpop.f32.mrf.mxu0  ;;  %v3723_v53 = vpop.f32.mrf.mxu1 }
 0x18b   : > { %v1375_v58 = vpop.f32.mrf.mxu0  ;;  %v3725_v59 = vpop.f32.mrf.mxu1 }
 0x18d   : > { %v1378_v0 = vpop.f32.mrf.mxu0  ;;  %v2652_v1 = vpop.f32.mrf.mxu1 }
 0x18e   : > { %v3728_v6 = vadd.f32 %v2652_v1, %v3654_v28 }
 0x18f   : > { %v1380_v8 = vpop.f32.mrf.mxu0  ;;  %v3730_v12 = vpop.f32.mrf.mxu1 }
 0x191   : > { %v1381_v13 = vpop.f32.mrf.mxu0  ;;  %v2653_v18 = vpop.f32.mrf.mxu1 }
 0x192   : > { %v3733_v19 = vadd.f32 %v2653_v18, %v3660_v32 }
 0x193   : > { %v1383_v24 = vpop.f32.mrf.mxu0  ;;  %v3735_v25 = vpop.f32.mrf.mxu1 }
 0x195   : > { %v1386_v30 = vpop.f32.mrf.mxu0  ;;  %v2656_v31 = vpop.f32.mrf.mxu1 }
 0x196   : > { %v3737_v36 = vadd.f32 %v2656_v31, %v1330_v50 }
 0x197   : > { %v1388_v37 = vpop.f32.mrf.mxu0  ;;  %v3739_v42 = vpop.f32.mrf.mxu1 }
 0x199   : > { %v1389_v28 = vpop.f32.mrf.mxu0  ;;  %v2657_v43 = vpop.f32.mrf.mxu1 }
 0x19a   : > { %v3741_v48 = vadd.f32 %v2657_v43, %v1333_v54 }
 0x19b   : > { %v1391_v58 = vpop.f32.mrf.mxu0  ;;  %v3743_v1 = vpop.f32.mrf.mxu1 }
 0x19d   : > { %v1394_v8 = vpop.f32.mrf.mxu0  ;;  %v2660_v32 = vpop.f32.mrf.mxu1 }
 0x19e   : > { %v3745_v18 = vadd.f32 %v2660_v32, %v1346_v10 }
 0x19f   : > { %v1396_v24 = vpop.f32.mrf.mxu0  ;;  %v1691_v9 = vpop.f32.mrf.mxu1 }
 0x1a0   : > { %v3748_v27 = vadd.f32 %v1691_v9, %v3697_v62 }
 0x1a1   : > { %v1397_v50 = vpop.f32.mrf.mxu0  ;;  %v2661_v31 = vpop.f32.mrf.mxu1 }
 0x1a2   : > { %v3750_v37 = vadd.f32 %v2661_v31, %v1349_v14 }
 0x1a3   : > { %v1399_v39 = vpop.f32.mrf.mxu0  ;;  %v1694_v23 = vpop.f32.mrf.mxu1 }
 0x1a4   : > { %v3753_v54 = vadd.f32 %v1694_v23, %v3701_v2 }
 0x1a5   : > { %v1402_v43 = vpop.f32.mrf.mxu0  ;;  %v2664_v58 = vpop.f32.mrf.mxu1 }
 0x1a6   : > { %v3755_v35 = vadd.f32 %v2664_v58, %v1362_v34 }
 0x1a7   : > { %v1404_v10 = vpop.f32.mrf.mxu0  ;;  %v1707_v32 = vpop.f32.mrf.mxu1 }
 0x1a8   : > { %v3757_v24 = vadd.f32 %v1707_v32, %v1354_v22 }
 0x1a9   : > { %v1405_v3 = vpop.f32.mrf.mxu0  ;;  %v2665_v9 = vpop.f32.mrf.mxu1 }
 0x1aa   : > { %v3759_v62 = vadd.f32 %v2665_v9, %v1365_v38 }
 0x1ab   : > { %v1407_v15 = vpop.f32.mrf.mxu0  ;;  %v1710_v14 = vpop.f32.mrf.mxu1 }
 0x1ac   : > { %v3762_v39 = vadd.f32 %v1710_v14, %v3711_v26 }
 0x1ad   : > { %v1410_v31 = vpop.f32.mrf.mxu0  ;;  %v2668_v2 = vpop.f32.mrf.mxu1 }
 0x1ae   : > { %v3764_v23 = vadd.f32 %v2668_v2, %v1378_v0 }
 0x1af   : > { %v1412_v63 = vpop.f32.mrf.mxu0  ;;  %v1723_v34 = vpop.f32.mrf.mxu1 }
 0x1b0   : > { %v3766_v58 = vadd.f32 %v1723_v34, %v1370_v46 }
 0x1b1   : > { %v1413_v10 = vpop.f32.mrf.mxu0  ;;  %v2669_v22 = vpop.f32.mrf.mxu1 }
 0x1b2   : > { %v3768_v32 = vadd.f32 %v2669_v22, %v1381_v13 }
 0x1b3   : > { %v1415_v11 = vpop.f32.mrf.mxu0  ;;  %v1726_v38 = vpop.f32.mrf.mxu1 }
 0x1b4   : > { %v3770_v9 = vadd.f32 %v1726_v38, %v1373_v52 }
 0x1b5   : > { %v1418_v15 = vpop.f32.mrf.mxu0  ;;  %v2672_v45 = vpop.f32.mrf.mxu1 }
 0x1b6   : > { %v3772_v26 = vadd.f32 %v2672_v45, %v1394_v8 }
 0x1b7   : > { %v1420_v14 = vpop.f32.mrf.mxu0  ;;  %v1739_v55 = vpop.f32.mrf.mxu1 }
 0x1b8   : > { %v3774_v0 = vadd.f32 %v1739_v55, %v1386_v30 }
 0x1b9   : > { %v1421_v63 = vpop.f32.mrf.mxu0  ;;  %v2673_v2 = vpop.f32.mrf.mxu1 }
 0x1ba   : > { %v3776_v46 = vadd.f32 %v2673_v2, %v1397_v50 }
 0x1bb   : > { %v1423_v34 = vpop.f32.mrf.mxu0  ;;  %v1742_v61 = vpop.f32.mrf.mxu1 }
 0x1bc   : > { %v3778_v13 = vadd.f32 %v1742_v61, %v1389_v28 }
 0x1bd   : > { %v1426_v11 = vpop.f32.mrf.mxu0  ;;  %v2676_v22 = vpop.f32.mrf.mxu1 }
 0x1be   : > { %v3780_v52 = vadd.f32 %v2676_v22, %v1410_v31 }
 0x1bf   : > { %v1428_v38 = vpop.f32.mrf.mxu0  ;;  %v1755_v41 = vpop.f32.mrf.mxu1 }
 0x1c0   : > { %v3782_v45 = vadd.f32 %v1755_v41, %v1402_v43 }
 0x1c1   : > { %v1429_v8 = vpop.f32.mrf.mxu0  ;;  %v2677_v14 = vpop.f32.mrf.mxu1 }
 0x1c2   : > { %v3784_v55 = vadd.f32 %v2677_v14, %v1413_v10 }
 0x1c3   : > { %v1431_v30 = vpop.f32.mrf.mxu0  ;;  %v1758_v57 = vpop.f32.mrf.mxu1 }
 0x1c4   : > { %v3786_v50 = vadd.f32 %v1758_v57, %v1405_v3 }
 0x1c5   : > { %v1434_v2 = vpop.f32.mrf.mxu0  ;;  %v2680_v34 = vpop.f32.mrf.mxu1 }
 0x1c6   : > { %v3788_v61 = vadd.f32 %v2680_v34, %v1426_v11 }
 0x1c7   : > { %v1436_v28 = vpop.f32.mrf.mxu0  ;;  %v1771_v5 = vpop.f32.mrf.mxu1 }
 0x1c8   : > { %v3790_v31 = vadd.f32 %v1771_v5, %v1418_v15 }
 0x1c9   : > { %v1437_v22 = vpop.f32.mrf.mxu0  ;;  %v2681_v38 = vpop.f32.mrf.mxu1 }
 0x1ca   : > { %v3792_v41 = vadd.f32 %v2681_v38, %v1429_v8 }
 0x1cb   : > { %v1439_v43 = vpop.f32.mrf.mxu0  ;;  %v1774_v51 = vpop.f32.mrf.mxu1 }
 0x1cc   : > { %v3794_v10 = vadd.f32 %v1774_v51, %v1421_v63 }
 0x1cd   : > { %v1442_v14 = vpop.f32.mrf.mxu0  ;;  %v2684_v30 = vpop.f32.mrf.mxu1 }
 0x1ce   : > { %v3796_v57 = vadd.f32 %v2684_v30, %v1442_v14 }
 0x1cf   : > { %v1444_v3 = vpop.f32.mrf.mxu0  ;;  %v1787_v21 = vpop.f32.mrf.mxu1 }
 0x1d0   : > { %4304 = vst [vmem:[#allocation27_spill] sm:$0xff] %v3796_v57  ;;  %v3798_v11 = vadd.f32 %v1787_v21, %v1434_v2 }
 0x1d1   : > { %v1445_v34 = vpop.f32.mrf.mxu0  ;;  %v2685_v28 = vpop.f32.mrf.mxu1 }
 0x1d2   : > { %4305 = vst [vmem:[#allocation28_spill] sm:$0xff] %v3798_v11  ;;  %v3800_v5 = vadd.f32 %v2685_v28, %v1445_v34 }
 0x1d3   : > { %v1447_v15 = vpop.f32.mrf.mxu0  ;;  %v1790_v33 = vpop.f32.mrf.mxu1 }
 0x1d4   : > { %v3802_v8 = vadd.f32 %v1790_v33, %v1437_v22 }
 0x1d5   : > { %v1450_v38 = vpop.f32.mrf.mxu0  ;;  %v2688_v43 = vpop.f32.mrf.mxu1 }
 0x1d7   : > { %v1452_v51 = vpop.f32.mrf.mxu0  ;;  %v1803_v63 = vpop.f32.mrf.mxu1 }
 0x1d8   : > { %v3804_v17 = vadd.f32 %v1803_v63, %v1450_v38 }
 0x1d9   : > { %v1453_v14 = vpop.f32.mrf.mxu0  ;;  %v2689_v30 = vpop.f32.mrf.mxu1 }
 0x1da   : > { %4306 = vst [vmem:[#allocation29_spill] sm:$0xff] %v3804_v17 }
 0x1db   : > { %v1455_v3 = vpop.f32.mrf.mxu0  ;;  %v1806_v57 = vpop.f32.mrf.mxu1 }
 0x1dc   : > { %v3806_v21 = vadd.f32 %v1806_v57, %v1453_v14 }
 0x1dd   : > { %v1458_v2 = vpop.f32.mrf.mxu0  ;;  %v3808_v11 = vpop.f32.mrf.mxu1 }
 0x1de   : > { %4307 = vst [vmem:[#allocation30_spill] sm:$0xff] %v3806_v21  ;;  %v3810_v34 = vadd.f32 %v2688_v43, %v1458_v2 }
 0x1df   : > { %v1460_v28 = vpop.f32.mrf.mxu0  ;;  %v3812_v33 = vpop.f32.mrf.mxu1 }
 0x1e0   : > { %4308 = vst [vmem:[#allocation31_spill] sm:$0xff] %v3810_v34 }
 0x1e1   : > { %v1461_v22 = vpop.f32.mrf.mxu0  ;;  %v3814_v15 = vpop.f32.mrf.mxu1 }
 0x1e2   : > { %4309 = vst [vmem:[#allocation32_spill] sm:$0xff] %v3814_v15  ;;  %v3816_v51 = vadd.f32 %v2689_v30, %v1461_v22 }
 0x1e3   : > { %v1463_v38 = vpop.f32.mrf.mxu0  ;;  %v3818_v63 = vpop.f32.mrf.mxu1 }
 0x1e4   : > { %4310 = vst [vmem:[#allocation33_spill] sm:$0xff] %v3816_v51 }
 0x1e5   : > { %v3820_v3 = vpop.f32.mrf.mxu0  ;;  %v3822_v57 = vpop.f32.mrf.mxu1 }
 0x1e6   : > { %4311 = vst [vmem:[#allocation34_spill] sm:$0xff] %v3822_v57 }
 0x1e7   : > { %v1468_v14 = vpop.f32.mrf.mxu0  ;;  %v3824_v21 = vpop.f32.mrf.mxu1 }
 0x1e8   : > { %4312 = vst [vmem:[#allocation35_spill] sm:$0xff] %v3824_v21 }
 0x1e9   : > { %v3826_v43 = vpop.f32.mrf.mxu0  ;;  %v3828_v2 = vpop.f32.mrf.mxu1 }
 0x1ea   : > { %4313 = vst [vmem:[#allocation36_spill] sm:$0xff] %v3828_v2 }
 0x1eb   : > { %v1471_v28 = vpop.f32.mrf.mxu0  ;;  %v3830_v34 = vpop.f32.mrf.mxu1 }
 0x1ec   : > { %4314 = vst [vmem:[#allocation37_spill] sm:$0xff] %v3830_v34 }
 0x1ed   : > { %v3832_v15 = vpop.f32.mrf.mxu0  ;;  %v3834_v30 = vpop.f32.mrf.mxu1 }
 0x1ee   : > { %4315 = vst [vmem:[#allocation38_spill] sm:$0xff] %v3834_v30 }
 0x1ef   : > { %v1476_v22 = vpop.f32.mrf.mxu0  ;;  %v3836_v38 = vpop.f32.mrf.mxu1 }
 0x1f0   : > { %4316 = vst [vmem:[#allocation39_spill] sm:$0xff] %v3836_v38  ;;  %v1652_v38 = vadd.f32 %v3719_v47, %v3610_v4  ;;  %v3873_v4 = vld [vmem:[%s3137_s29 + $0x18] sm:$0xff]  ;;  %v3876_v47 = vld [vmem:[%s3137_s29 + $0x8] sm:$0xff] }
 0x1f1   : > { %v3838_v57 = vpop.f32.mrf.mxu0  ;;  %v3840_v14 = vpop.f32.mrf.mxu1 }
 0x1f2   : > { %4317 = vst [vmem:[#allocation40_spill] sm:$0xff] %v3840_v14  ;;  %v3859_v14 = vld [vmem:[%s3137_s29 + $0x10] sm:$0xff] }
 0x1f3   : > { %v1479_v21 = vpop.f32.mrf.mxu0  ;;  %v3842_v51 = vpop.f32.mrf.mxu1 }
 0x1f4   : > { %4318 = vst [vmem:[#allocation41_spill] sm:$0xff] %v3842_v51  ;;  %v1644_v21 = vadd.f32 %v3721_v49, %v3588_v56  ;;  %v3862_v51 = vld [vmem:[%s3137_s29] sm:$0xff]  ;;  %v1663_v56 = vadd.f32 %v3735_v25, %v3638_v20  ;;  %v1676_v49 = vadd.f32 %v3739_v42, %v3676_v40  ;;  %v3900_v40 = vmul.f32 %v3859_v14, %v3728_v6  ;;  %s4175_s29 = scalar_lea.vmem [#allocation5], %s2412_s25  ;;  %s2588_s25 = sshll.u32 %s2403_s16, 7 }
 0x1f5   : > { %v3844_v28 = vpop.f32.mrf.mxu0  ;;  %v3846_v2 = vpop.f32.mrf.mxu1  ;;  %v3919_v6 = vmul.f32 %v3873_v4, %v3741_v48  ;;  %v2099_v48 = vmul.f32 %v3876_v47, %v3753_v54  ;;  %s2318_s22 = sshll.u32 %s4175_s29, 4  ;;  %s4232_s28 = scalar_lea.hbm %s4281_s3, %s2588_s25  ;;  %s4234_s22 = int_to_ptr.vmem [resolvable:$true] %s2318_s22 }
 0x1f6   : > { %4319 = vst [vmem:[#allocation42_spill] sm:$0xff] %v3846_v2  ;;  %v1655_v2 = vadd.f32 %v3723_v53, %v3616_v7  ;;  %v1679_v7 = vadd.f32 %v3743_v1, %v3682_v44  ;;  %v3909_v1 = vmul.f32 %v3873_v4, %v3733_v19  ;;  %v2096_v19 = vmul.f32 %v3862_v51, %v3748_v27  ;;  %s2306_s16 = scalar_lea.sflag [#allocation6], %s3120_s17  ;;  %s2962_s30 = scalar_lea.vmem %s4234_s22, 512 }
 0x1f7   : > { %v1484_v34 = vpop.f32.mrf.mxu0  ;;  %v3848_v17 = vpop.f32.mrf.mxu1  ;;  %v3948_v27 = vmul.f32 %v3873_v4, %v3759_v62  ;;  %v3970_v62 = vmul.f32 %v3876_v47, %v3770_v9  ;;  %v3990_v9 = vmul.f32 %v3859_v14, %v3780_v52  ;;  %p2963_p13 = scmp.ne.s32.totalorder %s4234_s22, %s2962_s30  ;;  %p2969_p2 = scmp.lt.s32.totalorder %s4234_s22, %s2967_s5 }
 0x1f8   : > { %4320 = vst [vmem:[#allocation43_spill] sm:$0xff] %v3848_v17  ;;  %v1647_v34 = vadd.f32 %v3725_v59, %v3594_v60  ;;  %v1660_v17 = vadd.f32 %v3730_v12, %v3632_v16  ;;  %v3889_v16 = vmul.f32 %v3859_v14, %v1652_v38  ;;  %v2045_v59 = vmul.f32 %v3862_v51, %v1644_v21  ;;  %p2970_p3 = scmp.lt.s32.totalorder %s2968_s6, %s2962_s30 }
 0x1f9   : > { %v3850_v30 = vpop.f32.mrf.mxu0  ;;  %v3852_v22 = vpop.f32.mrf.mxu1  ;;  %v3893_v12 = vmul.f32 %v3873_v4, %v1655_v2  ;;  %v3912_v2 = vmul.f32 %v3876_v47, %v1663_v56  ;;  %v2087_v38 = vmul.f32 %v3859_v14, %v3737_v36  ;;  %v3924_v21 = vmul.f32 %v3859_v14, %v3745_v18  ;;  %p2964_p0 = pnand %p2963_p13, %p3092_p6 }
 0x1fa   : > { %4321 = vst [vmem:[#allocation44_spill] sm:$0xff] %v3850_v30  ;;  %4322 = vst [vmem:[#allocation45_spill] sm:$0xff] %v3852_v22  ;;  %v3896_v20 = vmul.f32 %v3876_v47, %v1647_v34  ;;  %v3903_v44 = vmul.f32 %v3862_v51, %v1660_v17  ;;  %v2084_v17 = vmul.f32 %v3876_v47, %v1679_v7  ;;  %p2971_p4 = por %p2970_p3, %p2969_p2 }
 0x1fb   : > { %v1487_v22 = vpop.f32.mrf.mxu0  ;;  %v3870_v30 = vpop.f32.mrf.mxu1  ;;  %v3934_v36 = vmul.f32 %v3873_v4, %v3750_v37  ;;  %v3944_v18 = vmul.f32 %v3862_v51, %v3757_v24  ;;  %v3952_v7 = vmul.f32 %v3876_v47, %v3762_v39  ;;  %v3956_v37 = vmul.f32 %v3859_v14, %v3764_v23  ;;  %p2965_p1 = pneg %p2964_p0 }
 0x1fc   : > { %4323 = vst [vmem:[#allocation46_spill] sm:$0xff] %v3870_v30  ;;  %v2081_v22 = vmul.f32 %v3862_v51, %v1676_v49  ;;  %v3940_v49 = vmul.f32 %v3859_v14, %v3755_v35  ;;  %v3960_v35 = vmul.f32 %v3862_v51, %v3766_v58  ;;  %v3966_v24 = vmul.f32 %v3873_v4, %v3768_v32 }
 0x1fd   : > { %v3884_v60 = vpop.f32.mrf.mxu0  ;;  %v3886_v53 = vpop.f32.mrf.mxu1  ;;  %4325 = vst [vmem:[#allocation48_spill] sm:$0xff] %v3956_v37  ;;  %v3974_v39 = vmul.f32 %v3859_v14, %v3772_v26  ;;  %v3978_v23 = vmul.f32 %v3862_v51, %v3774_v0  ;;  %v3982_v58 = vmul.f32 %v3873_v4, %v3776_v46  ;;  %v3986_v32 = vmul.f32 %v3876_v47, %v3778_v13  ;;  %v4331_v37 = vld [vmem:[#allocation28_spill] sm:$0xff]  ;;  %p2972_p5 = pnand %p2971_p4, %p2965_p1 }
 0x1fe   : > { %4326 = vst [vmem:[#allocation49_spill] sm:$0xff] %v3966_v24  ;;  %v3994_v26 = vmul.f32 %v3862_v51, %v3782_v45  ;;  %v4004_v46 = vmul.f32 %v3876_v47, %v3786_v50  ;;  %v4008_v13 = vmul.f32 %v3859_v14, %v3788_v61  ;;  %v4013_v45 = vmul.f32 %v3862_v51, %v3790_v31  ;;  %v4329_v50 = vld [vmem:[#allocation27_spill] sm:$0xff] }
 0x1ff   : > { %v1492_v25 = vpop.f32.mrf.mxu0  ;;  %v3905_v42 = vpop.f32.mrf.mxu1  ;;  %v4017_v30 = vmul.f32 %v3873_v4, %v3792_v41  ;;  %v4025_v24 = vmul.f32 %v3859_v14, %v4329_v50  ;;  %v1820_v31 = vadd.f32 %v3812_v33, %v3820_v3  ;;  %v4333_v41 = vld [vmem:[#allocation12_spill] sm:$0xff]  ;;  %v4040_v50 = vmul.f32 %v3876_v47, %v3802_v8  ;;  %v4337_v3 = vld [vmem:[#allocation29_spill] sm:$0xff] }
 0x200   : > { %4327 = vst [vmem:[#allocation50_spill] sm:$0xff] %v4008_v13 }
 0x201   : > { %v3928_v34 = vpop.f32.mrf.mxu0  ;;  %v3930_v56 = vpop.f32.mrf.mxu1  ;;  %4328 = vst [vmem:[#allocation51_spill] sm:$0xff] %v4017_v30  ;;  %4330 = vst [vmem:[#allocation27_spill] sm:$0xff] %v4025_v24 }
 0x202   : > { %4324 = vst [vmem:[#allocation47_spill] sm:$0xff] %v3930_v56  ;;  %v4000_v56 = vmul.f32 %v3873_v4, %v3784_v55  ;;  %v4021_v55 = vmul.f32 %v3876_v47, %v3794_v10  ;;  %v4036_v10 = vmul.f32 %v3873_v4, %v3800_v5  ;;  %4335 = vst [vmem:[#allocation52_spill] sm:$0xff] %v4040_v50  ;;  %v4340_v50 = vld [vmem:[#allocation31_spill] sm:$0xff] }
 0x203   : > { %v1495_v54 = vpop.f32.mrf.mxu0  ;;  %v3962_v25 = vpop.f32.mrf.mxu1 }
 0x204   : > { %4334 = vst [vmem:[#allocation12_spill] sm:$0xff] %v4036_v10  ;;  %v4339_v10 = vld [vmem:[#allocation30_spill] sm:$0xff] }
 0x205   : > { %v3996_v54 = vpop.f32.mrf.mxu0  ;;  %v2712_v0 = vpop.f32.mrf.mxu1  ;;  %v4055_v8 = vmul.f32 %v3876_v47, %v4339_v10 }
 0x206   : > { %v1908_v52 = vadd.f32 %v2712_v0, %v3656_v29  ;;  %v4029_v29 = vmul.f32 %v3862_v51, %v4331_v37  ;;  %v1828_v37 = vadd.f32 %v3808_v11, %v3832_v15  ;;  %v4341_v11 = vld [vmem:[#allocation33_spill] sm:$0xff] }
 0x207   : > { %v1500_v61 = vpop.f32.mrf.mxu0  ;;  %v1899_v13 = vpop.f32.mrf.mxu1  ;;  %v4063_v15 = vmul.f32 %v3873_v4, %v4341_v11 }
 0x208   : > { %4332 = vst [vmem:[#allocation28_spill] sm:$0xff] %v4029_v29  ;;  %v2082_v0 = vadd.f32 %v2081_v22, %v1908_v52  ;;  %v1900_v30 = vadd.f32 %v1899_v13, %v4333_v41  ;;  %v1823_v61 = vadd.f32 %v3818_v63, %v3826_v43  ;;  %v4050_v22 = vmul.f32 %v3862_v51, %v4337_v3  ;;  %v4338_v52 = vld [vmem:[#allocation14_spill] sm:$0xff]  ;;  %v4343_v43 = vld [vmem:[#allocation32_spill] sm:$0xff] }
 0x209   : > { %v4046_v24 = vpop.f32.mrf.mxu0  ;;  %v2713_v33 = vpop.f32.mrf.mxu1  ;;  %v4059_v63 = vmul.f32 %v3859_v14, %v4340_v50  ;;  %4342 = vst [vmem:[#allocation29_spill] sm:$0xff] %v4063_v15  ;;  %v1831_v3 = vadd.f32 %v4343_v43, %v3838_v57  ;;  %v4075_v50 = vmul.f32 %v3859_v14, %v1828_v37  ;;  %v4348_v15 = vld [vmem:[#allocation37_spill] sm:$0xff]  ;;  %v4349_v37 = vld [vmem:[#allocation34_spill] sm:$0xff] }
 0x20a   : > { %4336 = vst [vmem:[#allocation53_spill] sm:$0xff] %v4046_v24  ;;  %v2085_v13 = vadd.f32 %v2084_v17, %v2082_v0  ;;  %v2046_v5 = vadd.f32 %v2045_v59, %v1900_v30  ;;  %v1911_v41 = vadd.f32 %v2713_v33, %v4338_v52  ;;  %v4068_v30 = vmul.f32 %v3862_v51, %v1820_v31  ;;  %v4344_v52 = vld [vmem:[#allocation35_spill] sm:$0xff]  ;;  %v4345_v24 = vld [vmem:[#allocation13_spill] sm:$0xff]  ;;  %v4347_v31 = vld [vmem:[#allocation44_spill] sm:$0xff] }
 0x20b   : > { %v1503_v29 = vpop.f32.mrf.mxu0  ;;  %v1902_v17 = vpop.f32.mrf.mxu1  ;;  %v4072_v33 = vmul.f32 %v3876_v47, %v1823_v61  ;;  %v1836_v11 = vadd.f32 %v4344_v52, %v3844_v28 }
 0x20c   : > { %v2088_v59 = vadd.f32 %v2087_v38, %v2085_v13  ;;  %v2051_v0 = vadd.f32 %v3896_v20, %v2046_v5  ;;  %v2097_v10 = vadd.f32 %v2096_v19, %v1911_v41  ;;  %v1903_v57 = vadd.f32 %v1902_v17, %v4345_v24  ;;  %v4350_v24 = vld [vmem:[#allocation17_spill] sm:$0xff] }
 0x20d   : > { %v4080_v29 = vpop.f32.mrf.mxu0  ;;  %v2716_v43 = vpop.f32.mrf.mxu1  ;;  %v1839_v38 = vadd.f32 %v4348_v15, %v4347_v31  ;;  %v4087_v13 = vmul.f32 %v3873_v4, %v1831_v3  ;;  %v1844_v5 = vadd.f32 %v4349_v37, %v3884_v60  ;;  %v4352_v31 = vld [vmem:[#allocation8_spill] sm:$0xff]  ;;  %v4100_v3 = vmul.f32 %v3862_v51, %v1836_v11 }
 0x20e   : > { %4346 = vst [vmem:[#allocation14_spill] sm:$0xff] %v4080_v29  ;;  %v2091_v20 = vadd.f32 %v3919_v6, %v2088_v59  ;;  %v2056_v19 = vadd.f32 %v3889_v16, %v2051_v0  ;;  %v2100_v61 = vadd.f32 %v2099_v48, %v2097_v10  ;;  %v2067_v28 = vadd.f32 %v3903_v44, %v1903_v57  ;;  %v4351_v29 = vld [vmem:[#allocation10_spill] sm:$0xff]  ;;  %v4353_v59 = vld [vmem:[#allocation15_spill] sm:$0xff] }
 0x20f   : > { %v1924_v41 = vadd.f32 %v2716_v43, %v4350_v24  ;;  %v1508_v17 = vpop.f32.mrf.mxu0  ;;  %v1915_v52 = vpop.f32.mrf.mxu1  ;;  %v1892_v15 = vadd.f32 %v3886_v53, %v4351_v29  ;;  %v1884_v6 = vadd.f32 %v3905_v42, %v4352_v31  ;;  %v4108_v53 = vmul.f32 %v3876_v47, %v1839_v38  ;;  %v4354_v42 = vld [vmem:[#allocation9_spill] sm:$0xff]  ;;  %v4355_v29 = vld [vmem:[#allocation18_spill] sm:$0xff] }
 0x210   : > { %v2061_v16 = vadd.f32 %v3893_v12, %v2056_v19  ;;  %v2103_v48 = vadd.f32 %v3924_v21, %v2100_v61  ;;  %v2070_v60 = vadd.f32 %v3912_v2, %v2067_v28  ;;  %v1916_v0 = vadd.f32 %v1915_v52, %v4353_v59  ;;  %v4356_v28 = vld [vmem:[#allocation16_spill] sm:$0xff] }
 0x211   : > { %v2147_v44 = vadd.f32 %v3978_v23, %v1924_v41  ;;  %v4105_v10 = vpop.f32.mrf.mxu0  ;;  %v2717_v57 = vpop.f32.mrf.mxu1  ;;  %v1887_v12 = vadd.f32 %v3962_v25, %v4354_v42  ;;  %v4115_v43 = vmul.f32 %v3859_v14, %v1844_v5  ;;  %v4121_v38 = vmul.f32 %v3859_v14, %v1892_v15  ;;  %v4357_v5 = vld [vmem:[#allocation36_spill] sm:$0xff] }
 0x212   : > { %v2106_v21 = vadd.f32 %v3934_v36, %v2103_v48  ;;  %v1927_v11 = vadd.f32 %v2717_v57, %v4355_v29  ;;  %v2073_v2 = vadd.f32 %v3900_v40, %v2070_v60  ;;  %v2114_v19 = vadd.f32 %v3944_v18, %v1916_v0  ;;  %v4359_v57 = vld [vmem:[#allocation43_spill] sm:$0xff] }
 0x213   : > { %v2150_v23 = vadd.f32 %v3986_v32, %v2147_v44  ;;  %v1511_v61 = vpop.f32.mrf.mxu0  ;;  %v1918_v37 = vpop.f32.mrf.mxu1  ;;  %v4124_v25 = vmul.f32 %v3862_v51, %v1884_v6  ;;  %v4130_v41 = vadd.f32 %v4357_v5, %v3928_v34  ;;  %v4136_v15 = vmul.f32 %v3876_v47, %v1887_v12  ;;  %v4358_v6 = vld [vmem:[#allocation21_spill] sm:$0xff]  ;;  %v4360_v29 = vld [vmem:[#allocation19_spill] sm:$0xff] }
 0x214   : > { %v2162_v36 = vadd.f32 %v3994_v26, %v1927_v11  ;;  %v1919_v24 = vadd.f32 %v1918_v37, %v4356_v28  ;;  %v2076_v40 = vadd.f32 %v3909_v1, %v2073_v2  ;;  %v2118_v32 = vadd.f32 %v3952_v7, %v2114_v19  ;;  %v4362_v19 = vld [vmem:[#allocation48_spill] sm:$0xff]  ;;  %v4364_v5 = vld [vmem:[#allocation49_spill] sm:$0xff] }
 0x215   : > { %v2153_v18 = vadd.f32 %v3974_v39, %v2150_v23  ;;  %v1514_v17 = vpop.f32.mrf.mxu0  ;;  %v2720_v52 = vpop.f32.mrf.mxu1  ;;  %v2062_v34 = vmul.f32 %v2061_v16, %v3862_v51  ;;  %v2092_v42 = vmul.f32 %v3859_v14, %v2091_v20 }
 0x216   : > { %v2165_v31 = vadd.f32 %v4004_v46, %v2162_v36  ;;  %v2132_v26 = vadd.f32 %v3960_v35, %v1919_v24  ;;  %v1940_v48 = vadd.f32 %v2720_v52, %v4358_v6  ;;  %v2077_v60 = vmul.f32 %v3876_v47, %v2076_v40  ;;  %v4363_v36 = vld [vmem:[#allocation22_spill] sm:$0xff]  ;;  %v4366_v52 = vld [vmem:[#allocation20_spill] sm:$0xff] }
 0x217   : > { %v2156_v1 = vadd.f32 %v3982_v58, %v2153_v18  ;;  %v2122_v39 = vadd.f32 %v3940_v49, %v2118_v32  ;;  %v1516_v7 = vpop.f32.mrf.mxu0  ;;  %v1931_v44 = vpop.f32.mrf.mxu1  ;;  %v1868_v46 = vadd.f32 %v4359_v57, %v1514_v17  ;;  %v4361_v49 = vld [vmem:[#allocation39_spill] sm:$0xff]  ;;  %v4365_v18 = vld [vmem:[#allocation46_spill] sm:$0xff]  ;;  %v4372_v57 = vld [vmem:[#allocation28_spill] sm:$0xff] }
 0x218   : > { %v2168_v59 = vadd.f32 %v3990_v9, %v2165_v31  ;;  %v2135_v0 = vadd.f32 %v3970_v62, %v2132_v26  ;;  %v2212_v35 = vadd.f32 %v4050_v22, %v1940_v48  ;;  %v2078_v12 = vadd.f32 %v2077_v60, %v2062_v34  ;;  %v4367_v34 = vld [vmem:[#allocation29_spill] sm:$0xff] }
 0x219   : > { %v2126_v16 = vadd.f32 %v3948_v27, %v2122_v39  ;;  %v1932_v11 = vadd.f32 %v1931_v44, %v4360_v29  ;;  %v1517_v58 = vpop.f32.mrf.mxu0  ;;  %v2721_v2 = vpop.f32.mrf.mxu1  ;;  %v1852_v23 = vadd.f32 %v4361_v49, %v3996_v54  ;;  %v2107_v22 = vmul.f32 %v3873_v4, %v2106_v21  ;;  %v4368_v39 = vld [vmem:[#allocation25_spill] sm:$0xff] }
 0x21a   : > { %v2171_v9 = vadd.f32 %v4000_v56, %v2168_v59  ;;  %v2138_v62 = vadd.f32 %v4362_v19, %v2135_v0  ;;  %v2215_v61 = vadd.f32 %v4055_v8, %v2212_v35  ;;  %v2093_v37 = vadd.f32 %v2092_v42, %v2078_v12  ;;  %v4370_v44 = vld [vmem:[#allocation41_spill] sm:$0xff]  ;;  %v4374_v19 = vld [vmem:[#allocation52_spill] sm:$0xff] }
 0x21b   : > { %v2179_v20 = vadd.f32 %v4013_v45, %v1932_v11  ;;  %v1943_v27 = vadd.f32 %v2721_v2, %v4363_v36  ;;  %v1519_v28 = vpop.f32.mrf.mxu0  ;;  %v1934_v24 = vpop.f32.mrf.mxu1  ;;  %v2276_v54 = vmul.f32 %v3862_v51, %v1868_v46  ;;  %v1871_v32 = vadd.f32 %v4365_v18, %v1517_v58  ;;  %v4373_v58 = vld [vmem:[#allocation51_spill] sm:$0xff] }
 0x21c   : > { %v2141_v40 = vadd.f32 %v4364_v5, %v2138_v62  ;;  %v2218_v56 = vadd.f32 %v4059_v63, %v2215_v61  ;;  %v2108_v17 = vadd.f32 %v2107_v22, %v2093_v37  ;;  %v1935_v45 = vadd.f32 %v1934_v24, %v4366_v52  ;;  %v4369_v63 = vld [vmem:[#allocation53_spill] sm:$0xff]  ;;  %v4375_v61 = vld [vmem:[#allocation23_spill] sm:$0xff] }
 0x21d   : > { %v2183_v8 = vadd.f32 %v4021_v55, %v2179_v20  ;;  %v2227_v21 = vadd.f32 %v4068_v30, %v1943_v27  ;;  %v1522_v31 = vpop.f32.mrf.mxu0  ;;  %v2724_v26 = vpop.f32.mrf.mxu1  ;;  %v2127_v6 = vmul.f32 %v2126_v16, %v3862_v51  ;;  %v1855_v59 = vadd.f32 %v4370_v44, %v4369_v63  ;;  %v4371_v55 = vld [vmem:[#allocation50_spill] sm:$0xff] }
 0x21e   : > { %v2142_v48 = vmul.f32 %v3876_v47, %v2141_v40  ;;  %v2221_v60 = vadd.f32 %v4367_v34, %v2218_v56  ;;  %v1956_v7 = vadd.f32 %v2724_v26, %v4368_v39  ;;  %2109 = vst [vmem:[%s4175_s29] sm:$0xff] %v2108_v17  ;;  %v2197_v46 = vadd.f32 %v4372_v57, %v1935_v45  ;;  %v4376_v27 = vld [vmem:[#allocation42_spill] sm:$0xff]  ;;  %v4378_v40 = vld [vmem:[#allocation27_spill] sm:$0xff] }
 0x21f   : > { %v2187_v30 = vadd.f32 %v4371_v55, %v2183_v8  ;;  %v2230_v0 = vadd.f32 %v4072_v33, %v2227_v21  ;;  %v1524_v35 = vpop.f32.mrf.mxu0  ;;  %v1947_v42 = vpop.f32.mrf.mxu1  ;;  %v2157_v12 = vmul.f32 %v3859_v14, %v2156_v1  ;;  %v2172_v16 = vmul.f32 %v3873_v4, %v2171_v9  ;;  %v4377_v1 = vld [vmem:[#allocation26_spill] sm:$0xff]  ;;  %v4385_v57 = vld [vmem:[#allocation11_spill] sm:$0xff] }
 0x220   : > { %v2143_v29 = vadd.f32 %v2142_v48, %v2127_v6  ;;  %v2277_v11 = vadd.f32 %v2276_v54, %v1956_v7  ;;  %v2200_v62 = vadd.f32 %v4374_v19, %v2197_v46  ;;  %v1948_v22 = vadd.f32 %v1947_v42, %v4375_v61  ;;  %v4379_v17 = vld [vmem:[#allocation14_spill] sm:$0xff]  ;;  %v4382_v6 = vld [vmem:[#allocation45_spill] sm:$0xff] }
 0x221   : > { %v2191_v2 = vadd.f32 %v4373_v58, %v2187_v30  ;;  %v2233_v49 = vadd.f32 %v4075_v50, %v2230_v0  ;;  %v1525_v37 = vpop.f32.mrf.mxu0  ;;  %v2725_v33 = vpop.f32.mrf.mxu1  ;;  %v2279_v36 = vmul.f32 %v3876_v47, %v1871_v32  ;;  %v1876_v28 = vadd.f32 %v4376_v27, %v1522_v31  ;;  %v4380_v8 = vld [vmem:[#allocation38_spill] sm:$0xff]  ;;  %v4381_v31 = vld [vmem:[#allocation12_spill] sm:$0xff] }
 0x222   : > { %v2158_v20 = vadd.f32 %v2157_v12, %v2143_v29  ;;  %v1959_v24 = vadd.f32 %v2725_v33, %v4377_v1  ;;  %v2261_v9 = vmul.f32 %v3862_v51, %v1852_v23  ;;  %v2203_v50 = vadd.f32 %v4378_v40, %v2200_v62 }
 0x223   : > { %v2236_v5 = vadd.f32 %v4087_v13, %v2233_v49  ;;  %v2244_v54 = vadd.f32 %v4100_v3, %v1948_v22  ;;  %v1950_v56 = vpop.f32.mrf.mxu1  ;;  %v1527_v18 = vpop.f32.mrf.mxu0  ;;  %v1860_v21 = vadd.f32 %v4380_v8, %v4379_v17  ;;  %v2280_v32 = vadd.f32 %v2279_v36, %v2277_v11  ;;  %v4383_v13 = vld [vmem:[#allocation24_spill] sm:$0xff] }
 0x224   : > { %v2173_v52 = vadd.f32 %v2172_v16, %v2158_v20  ;;  %v2292_v45 = vadd.f32 %v4124_v25, %v1959_v24  ;;  %v2206_v26 = vadd.f32 %v4381_v31, %v2203_v50  ;;  %v1879_v48 = vadd.f32 %v4382_v6, %v1525_v37  ;;  %v4384_v3 = vld [vmem:[#allocation40_spill] sm:$0xff] }
 0x225   : > { %v2248_v23 = vadd.f32 %v4108_v53, %v2244_v54  ;;  %v1951_v34 = vadd.f32 %v1950_v56, %v4383_v13  ;;  %v2264_v39 = vmul.f32 %v3876_v47, %v1855_v59  ;;  %v1863_v7 = vadd.f32 %v4384_v3, %v4105_v10  ;;  %v4386_v59 = vld [vmem:[#allocation47_spill] sm:$0xff] }
 0x226   : > { %2174 = vst [vmem:[%s4175_s29 + $0x8] sm:$0xff] %v2173_v52  ;;  %v2192_v63 = vmul.f32 %v2191_v2, %v3862_v51  ;;  %v2282_v44 = vmul.f32 %v3859_v14, %v1876_v28  ;;  %v2207_v25 = vmul.f32 %v3876_v47, %v2206_v26  ;;  %v2295_v53 = vadd.f32 %v4136_v15, %v2292_v45 }
 0x227   : > { %v2252_v55 = vadd.f32 %v4115_v43, %v2248_v23  ;;  %v2262_v30 = vadd.f32 %v2261_v9, %v1951_v34  ;;  %v2255_v0 = vmul.f32 %v3873_v4, %v4130_v41  ;;  %v1895_v46 = vadd.f32 %v4386_v59, %v4385_v57 }
 0x228   : > { %v2267_v10 = vmul.f32 %v3859_v14, %v1860_v21  ;;  %v2222_v35 = vmul.f32 %v3859_v14, %v2221_v60  ;;  %v2208_v42 = vadd.f32 %v2207_v25, %v2192_v63  ;;  %v2283_v12 = vadd.f32 %v2282_v44, %v2280_v32 }
 0x229   : > { %v2285_v16 = vmul.f32 %v3873_v4, %v1879_v48  ;;  %v2265_v43 = vadd.f32 %v2264_v39, %v2262_v30  ;;  %v2270_v15 = vmul.f32 %v3873_v4, %v1863_v7  ;;  %v2237_v29 = vmul.f32 %v3873_v4, %v2236_v5 }
 0x22a   : > { %v2223_v41 = vadd.f32 %v2222_v35, %v2208_v42  ;;  %v2256_v11 = vadd.f32 %v2255_v0, %v2252_v55  ;;  %v2298_v58 = vadd.f32 %v4121_v38, %v2295_v53  ;;  %v2300_v49 = vmul.f32 %v3873_v4, %v1895_v46 }
 0x22b   : > { %v2268_v2 = vadd.f32 %v2267_v10, %v2265_v43  ;;  %v2286_v60 = vadd.f32 %v2285_v16, %v2283_v12 }
 0x22c   : > { %v2238_v19 = vadd.f32 %v2237_v29, %v2223_v41  ;;  %v2257_v61 = vmul.f32 %v2256_v11, %v3862_v51  ;;  %v2301_v22 = vadd.f32 %v2300_v49, %v2298_v58 }
 0x22d   : > { %v2271_v62 = vadd.f32 %v2270_v15, %v2268_v2  ;;  %v2287_v33 = vmul.f32 %v3859_v14, %v2286_v60 }
 0x22e   : > { %2239 = vst [vmem:[%s4175_s29 + $0x10] sm:$0xff] %v2238_v19  ;;  %v2302_v20 = vmul.f32 %v3873_v4, %v2301_v22 }
 0x22f   : > { %v2272_v37 = vmul.f32 %v3876_v47, %v2271_v62 }
 0x231   : > { %v2273_v38 = vadd.f32 %v2272_v37, %v2257_v61 }
 0x233   : > { %v2288_v36 = vadd.f32 %v2287_v33, %v2273_v38 }
 0x235   : > { %v2303_v51 = vadd.f32 %v2302_v20, %v2288_v36 }
 0x237   : > { %2304 = vst [vmem:[%s4175_s29 + $0x18] sm:$0xff] %v2303_v51 }
 0x238   : > { %2975 = shalt.err (!%p2972_p5)
}
 0x239   : > { %s2976_s7 = scalar_lea.hbm %s4232_s28, 512  ;;  %s2980_s10 = scalar_lea.hbm %s4281_s3, 1024 }
 0x23a   : > { %p2977_p7 = scmp.ne.s32.totalorder %s4232_s28, %s2976_s7  ;;  %p2981_p12 = scmp.lt.s32.totalorder %s4232_s28, %s4281_s3 }
 0x23b   : > { %p2982_p13 = scmp.lt.s32.totalorder %s2980_s10, %s2976_s7 }
 0x23c   : > { %p2978_p10 = pnand %p2977_p7, %p3092_p6 }
 0x23d   : > { %p2983_p0 = por %p2982_p13, %p2981_p12 }
 0x23e   : > { %p2979_p11 = pneg %p2978_p10 }
 0x240   : > { %p2984_p1 = pnand %p2983_p0, %p2979_p11 }
 0x242   : > { %2987 = shalt.err (!%p2984_p1)
}
 0x243   : > { %s3027_s20 = smov 128   ;;  %s3028_s29 = smov 256  }
 0x244   : > { %s3029_s25 = smov 8  }
 0x245   : > { %2758 = dma.vmem_to_hbm [thread:$0]  (%p3092_p6), %s4234_s22, 512, %s4232_s28, %s2306_s16, %s3027_s20, %s3028_s29, %s3029_s25  }
 0x246 PF: > { %s2333_s26 = sand.u32 1, %s3010_s12   ;;  %p2761_p2 = pnand %p2406_p9, %p3096_p8 }
 0x247   : > { %s2334_s27 = scalar_lea.sflag [#allocation6], %s2333_s26 }
 0x248   : > { %p2762_p3 = pneg %p2761_p2 }
 0x24a   : > { %3005 = dma.done.wait (%p2762_p3), %s2334_s27, 512  }
 0x24b   : > { %3007 = vsyncadd (%p2762_p3), %s2334_s27, 4294966784  ;;  %p13_p4 = scmp.ge.s32.totalorder %s3073_s18, 4   ;;  %s4387_s12 = smov %s3014_s13 }
 0x24c   : > { %s4388_s13 = smov %s3018_s14  ;;  %s4389_s14 = smov %s3086_s21 }
 0x24d   : > { %s4390_s15 = smov %s3073_s18  ;;  %15 = sbr.rel (!%p13_p4) target bundleno = 3 (0x3), region = 159 }
 0x252   :  { %2339 = vsyncpa [#allocation6], 1 }
 0x253   :  { %2341 = vsyncpa [#allocation6 + $0x1], 1 }

</bundles_post_ra>
